<compile_context>
chip_gen: v5e
topology: v5e:2x2
jax: 0.10.0
libtpu: 0.0.40
codegen_flags: <defaults>
</compile_context>

<pallas_src>
import math
import functools

import jax
import jax.numpy as jnp
from jax.experimental import pallas as pl
from jax.experimental.pallas import tpu as pltpu


# MXU-operand / inter-kernel-intermediate dtype.  bf16 operands give ~2-4x MXU
# throughput on all generations and halve HBM traffic for q/k/v and the
# attention output; accumulation, softmax stats and LayerNorm stats stay f32.
MXU_DTYPE = jnp.bfloat16


def _query_vmem_cap():
    try:
        return int(pltpu.get_tpu_info().vmem_capacity_bytes)
    except Exception:
        return 128 * 1024 * 1024      # v5e/v6e default


_VMEM_CAP = _query_vmem_cap()
# ~75% of physical VMEM: 96 MiB on v5e/v6e (128 MiB), 48 MiB on v7x (64 MiB).
_VMEM_LIMIT = min(int(_VMEM_CAP * 3 // 4), 100 * 1024 * 1024)
# Smaller row-tile target on v7x (64 MiB VMEM), larger on v5e/v6e.
_ROW_TILE_TARGET = 512 if _VMEM_CAP >= 96 * 1024 * 1024 else 256


def _row_tile(m, target):
    """Largest row tile <= target that evenly divides m (multiple of 8 if < m).

    Falls back to an un-tiled block for awkward m (always correct; only a perf
    concern for very large m).  TODO(synk): pad m to a multiple of 8*target in
    the wrapper for huge, divisor-free m.
    """
    if m <= target:
        return m
    for t in range(target, 7, -8):
        if m % t == 0:
            return t
    return m


def _compiler_params(dims):
    return pltpu.CompilerParams(dimension_semantics=dims,
                                vmem_limit_bytes=_VMEM_LIMIT)


# ----------------------------------------------------------------------------
# Kernel 1: fused cnn1 (1x1 conv + ReLU) + Q/K/V projections (3 outputs)
# ----------------------------------------------------------------------------
def _cnn1_qkv_kernel(x_ref, w1_ref, b1_ref, wq_ref, bq_ref, wk_ref, bk_ref,
                     wv_ref, bv_ref, q_ref, k_ref, v_ref):
    h = jnp.dot(x_ref[...].astype(MXU_DTYPE), w1_ref[...],
                preferred_element_type=jnp.float32)
    h = jnp.maximum(h + b1_ref[...], 0.0).astype(MXU_DTYPE)
    q_ref[...] = (jnp.dot(h, wq_ref[...], preferred_element_type=jnp.float32)
                  + bq_ref[...]).astype(q_ref.dtype)
    k_ref[...] = (jnp.dot(h, wk_ref[...], preferred_element_type=jnp.float32)
                  + bk_ref[...]).astype(k_ref.dtype)
    v_ref[...] = (jnp.dot(h, wv_ref[...], preferred_element_type=jnp.float32)
                  + bv_ref[...]).astype(v_ref.dtype)


def cnn1_qkv(x, w1, b1, wq, bq, wk, bk, wv, bv):
    M, C = x.shape
    E = w1.shape[1]
    tm = _row_tile(M, _ROW_TILE_TARGET)
    # weights in MXU dtype (halves weight DMA + VMEM footprint); biases f32.
    w1m, wqm, wkm, wvm = (w.astype(MXU_DTYPE) for w in (w1, wq, wk, wv))
    cost = pl.CostEstimate(
        flops=2 * M * C * E + 3 * 2 * M * E * E,
        transcendentals=0,
        bytes_accessed=4 * M * C + 2 * (C * E + 3 * E * E + 3 * M * E))
    const = lambda i: (0, 0)
    row = lambda i: (i, 0)
    # TODO(synk): single-buffer the constant weight blocks via
    # pipeline_mode=pl.Buffered(1) once confirmed supported (v7x VMEM win).
    out = pl.pallas_call(
        _cnn1_qkv_kernel,
        out_shape=tuple(jax.ShapeDtypeStruct((M, E), MXU_DTYPE) for _ in range(3)),
        grid=(M // tm,),
        in_specs=[
            pl.BlockSpec((tm, C), row),
            pl.BlockSpec((C, E), const), pl.BlockSpec((1, E), const),
            pl.BlockSpec((E, E), const), pl.BlockSpec((1, E), const),
            pl.BlockSpec((E, E), const), pl.BlockSpec((1, E), const),
            pl.BlockSpec((E, E), const), pl.BlockSpec((1, E), const),
        ],
        out_specs=[pl.BlockSpec((tm, E), row)] * 3,
        compiler_params=_compiler_params(("parallel",)),
        cost_estimate=cost,
    )(x, w1m, b1.reshape(1, E), wqm, bq.reshape(1, E),
      wkm, bk.reshape(1, E), wvm, bv.reshape(1, E))
    return out


# ----------------------------------------------------------------------------
# Kernel 2: fused multi-head self-attention + output projection (q-row tiled)
# ----------------------------------------------------------------------------
def _attn_outproj_kernel(q_ref, k_ref, v_ref, wo_ref, bo_ref, o_ref, *,
                         n_heads, d_head, scale):
    """q_ref: (1,tq,E)  k/v_ref: (1,S,E)  wo_ref: (E,E)  o_ref: (1,tq,E)."""
    ctx = []
    # TODO(synk): for very long sequences (S >> few thousand) replace the
    # per-head (tq,S) score matrix with a kv-tiled online softmax.
    for h in range(n_heads):
        lo, hi = h * d_head, (h + 1) * d_head
        # scale folded into q: tq*dh multiplies instead of tq*S.
        q = q_ref[0, :, lo:hi] * scale                          # (tq, dh) bf16
        k = k_ref[0, :, lo:hi]                                  # (S,  dh) bf16
        v = v_ref[0, :, lo:hi]                                  # (S,  dh) bf16
        # contract over d_head directly -- no explicit k.T / XLU transpose.
        s = jax.lax.dot_general(
            q.astype(MXU_DTYPE), k.astype(MXU_DTYPE),
            dimension_numbers=(((1,), (1,)), ((), ())),
            preferred_element_type=jnp.float32)                 # (tq, S) f32
        m = jnp.max(s, axis=-1, keepdims=True)
        # exp in MXU_DTYPE (bf16 EUP on v6e/v7x; falls back to f32 on v5e).
        p = jnp.exp((s - m).astype(MXU_DTYPE))
        l = jnp.sum(p.astype(jnp.float32), axis=-1, keepdims=True)
        o_h = jnp.dot(p, v.astype(MXU_DTYPE),
                      preferred_element_type=jnp.float32)       # (tq, dh)
        # deferred softmax normalization: tq*dh multiplies instead of tq*S.
        o_h = o_h * pl.reciprocal(l, approx=True)               # EUP slot
        ctx.append(o_h.astype(MXU_DTYPE))
    # one full-E contraction for the output projection (full MXU depth),
    # instead of n_heads d_head-deep accumulating matmuls.
    ctx = jnp.concatenate(ctx, axis=-1)                         # (tq, E)
    out = jnp.dot(ctx, wo_ref[...], preferred_element_type=jnp.float32)
    o_ref[0, :, :] = (out + bo_ref[...]).astype(o_ref.dtype)


def attention_outproj(q, k, v, wo, bo, n_heads):
    B, S, E = q.shape
    d_head = E // n_heads
    scale = 1.0 / math.sqrt(d_head)
    tq = _row_tile(S, min(_ROW_TILE_TARGET, 512))
    wom = wo.astype(MXU_DTYPE)
    cost = pl.CostEstimate(
        flops=B * (4 * S * S * E + 2 * S * E * E),
        transcendentals=B * n_heads * S * S,
        bytes_accessed=2 * (3 * B * S * E + E * E + B * S * E))
    return pl.pallas_call(
        functools.partial(_attn_outproj_kernel, n_heads=n_heads,
                          d_head=d_head, scale=scale),
        out_shape=jax.ShapeDtypeStruct((B, S, E), MXU_DTYPE),
        grid=(B, S // tq),
        in_specs=[
            pl.BlockSpec((1, tq, E), lambda b, qi: (b, qi, 0)),
            pl.BlockSpec((1, S, E), lambda b, qi: (b, 0, 0)),   # k resident
            pl.BlockSpec((1, S, E), lambda b, qi: (b, 0, 0)),   # v resident
            pl.BlockSpec((E, E), lambda b, qi: (0, 0)),
            pl.BlockSpec((1, E), lambda b, qi: (0, 0)),
        ],
        out_specs=pl.BlockSpec((1, tq, E), lambda b, qi: (b, qi, 0)),
        compiler_params=_compiler_params(("parallel", "parallel")),
        cost_estimate=cost,
    )(q, k, v, wom, bo.reshape(1, E))


# ----------------------------------------------------------------------------
# Kernel 3: fused cnn2 (1x1 conv + ReLU) + residual add + LayerNorm(channels)
# ----------------------------------------------------------------------------
def _cnn2_addln_kernel(a_ref, r_ref, w2_ref, b2_ref, g_ref, beta_ref, o_ref, *,
                       eps):
    h2 = jnp.dot(a_ref[...].astype(MXU_DTYPE), w2_ref[...],
                 preferred_element_type=jnp.float32)
    h2 = jnp.maximum(h2 + b2_ref[...], 0.0)
    y = h2 + r_ref[...].astype(jnp.float32)                     # (tm, C)
    mu = jnp.mean(y, axis=-1, keepdims=True)
    var = jnp.mean((y - mu) * (y - mu), axis=-1, keepdims=True)
    yn = (y - mu) * jax.lax.rsqrt(var + eps)
    o_ref[...] = (yn * g_ref[...] + beta_ref[...]).astype(o_ref.dtype)


def cnn2_add_layernorm(a, residual, w2, b2, gamma, beta, eps=1e-5):
    M, E = a.shape
    C = w2.shape[1]
    tm = _row_tile(M, _ROW_TILE_TARGET)
    w2m = w2.astype(MXU_DTYPE)
    cost = pl.CostEstimate(
        flops=2 * M * E * C + 10 * M * C,
        transcendentals=M,
        bytes_accessed=2 * M * E + 2 * E * C + 4 * (M * C + M * C))
    const = lambda i: (0, 0)
    row = lambda i: (i, 0)
    return pl.pallas_call(
        functools.partial(_cnn2_addln_kernel, eps=eps),
        out_shape=jax.ShapeDtypeStruct((M, C), jnp.float32),
        grid=(M // tm,),
        in_specs=[
            pl.BlockSpec((tm, E), row),
            pl.BlockSpec((tm, C), row),
            pl.BlockSpec((E, C), const),
            pl.BlockSpec((1, C), const),
            pl.BlockSpec((1, C), const),
            pl.BlockSpec((1, C), const),
        ],
        out_specs=pl.BlockSpec((tm, C), row),
        compiler_params=_compiler_params(("parallel",)),
        cost_estimate=cost,
    )(a, residual, w2m, b2.reshape(1, C), gamma.reshape(1, C),
      beta.reshape(1, C))


# ----------------------------------------------------------------------------
# Positional-encoding add: row-tiled, one (S,C) PE block reused for every batch
# ----------------------------------------------------------------------------
def _add_pe_kernel(x_ref, pe_ref, o_ref):
    o_ref[0, :, :] = x_ref[0, :, :] + pe_ref[...]


def add_positional_encoding(x_bsc, pe_sc):
    B, S, C = x_bsc.shape
    ts = _row_tile(S, min(_ROW_TILE_TARGET, 512))
    return pl.pallas_call(
        _add_pe_kernel,
        out_shape=jax.ShapeDtypeStruct((B, S, C), x_bsc.dtype),
        grid=(B, S // ts),
        in_specs=[
            pl.BlockSpec((1, ts, C), lambda b, j: (b, j, 0)),
            pl.BlockSpec((ts, C), lambda b, j: (j, 0)),   # PE reused per batch
        ],
        out_specs=pl.BlockSpec((1, ts, C), lambda b, j: (b, j, 0)),
        compiler_params=_compiler_params(("parallel", "parallel")),
    )(x_bsc, pe_sc)


# ----------------------------------------------------------------------------
# Parameter / buffer construction (deterministic, in-script)
# ----------------------------------------------------------------------------
def make_pos_encoding(d_model, height, width):
    """Reproduces PositionalEncoding.pe, returned channels-last (H, W, C)."""
    assert d_model % 2 == 0
    half = d_model // 2
    div_term = jnp.exp(jnp.arange(0, half, 2, dtype=jnp.float32)
                       * (-math.log(10000.0) / half))
    pos_w = jnp.arange(width, dtype=jnp.float32)
    pos_h = jnp.arange(height, dtype=jnp.float32)

    pe_x = jnp.zeros((half, width), jnp.float32)
    pe_x = pe_x.at[0::2, :].set(jnp.sin(div_term[:, None] * pos_w[None, :]))
    pe_x = pe_x.at[1::2, :].set(jnp.cos(div_term[:, None] * pos_w[None, :]))

    pe_y = jnp.zeros((half, height), jnp.float32)
    pe_y = pe_y.at[0::2, :].set(jnp.sin(div_term[:, None] * pos_h[None, :]))
    pe_y = pe_y.at[1::2, :].set(jnp.cos(div_term[:, None] * pos_h[None, :]))

    pe = jnp.zeros((d_model, height, width), jnp.float32)            # (C,H,W)
    pe = pe.at[:half, :, :].set(
        jnp.broadcast_to(pe_y[:, :, None], (half, height, width)))
    pe = pe.at[half:, :, :].set(
        jnp.broadcast_to(pe_x[:, None, :], (half, height, width)))
    return jnp.transpose(pe, (1, 2, 0))                              # (H,W,C)


def init_params(key, in_channels, d_embed, enc_unit):
    layers = []
    for _ in range(enc_unit):
        key, *ks = jax.random.split(key, 8)
        layers.append(dict(
            w1=0.05 * jax.random.normal(ks[0], (in_channels, d_embed), jnp.float32),
            b1=jnp.zeros((d_embed,), jnp.float32),
            wq=0.05 * jax.random.normal(ks[1], (d_embed, d_embed), jnp.float32),
            bq=jnp.zeros((d_embed,), jnp.float32),
            wk=0.05 * jax.random.normal(ks[2], (d_embed, d_embed), jnp.float32),
            bk=jnp.zeros((d_embed,), jnp.float32),
            wv=0.05 * jax.random.normal(ks[3], (d_embed, d_embed), jnp.float32),
            bv=jnp.zeros((d_embed,), jnp.float32),
            wo=0.05 * jax.random.normal(ks[4], (d_embed, d_embed), jnp.float32),
            bo=jnp.zeros((d_embed,), jnp.float32),
            w2=0.05 * jax.random.normal(ks[5], (d_embed, in_channels), jnp.float32),
            b2=jnp.zeros((in_channels,), jnp.float32),
            gamma=jnp.ones((in_channels,), jnp.float32),
            beta=jnp.zeros((in_channels,), jnp.float32),
        ))
    return layers


# ----------------------------------------------------------------------------
# Encoder forward (Pallas) and pure-JAX reference
# ----------------------------------------------------------------------------
def encoder_forward(x_nchw, layers, pe_hwc, n_heads):
    B, C, H, W = x_nchw.shape
    S = H * W

    # NCHW -> (B, S, C): the only layout transpose on the way in.
    x = jnp.transpose(x_nchw, (0, 2, 3, 1)).reshape(B, S, C)

    # x + positional encoding (PE stays (S,C); no batch broadcast in HBM).
    x = add_positional_encoding(x, pe_hwc.reshape(S, C))

    for p in layers:
        E = p["w1"].shape[1]
        residual = x.reshape(B * S, C)                                # free

        # fused 1x1-conv(+ReLU) + Q/K/V projections  -> 3 x (B*S, E) bf16
        q, k, v = cnn1_qkv(residual, p["w1"], p["b1"], p["wq"], p["bq"],
                           p["wk"], p["bk"], p["wv"], p["bv"])

        # fused multi-head attention + output projection -> (B, S, E) bf16
        a = attention_outproj(q.reshape(B, S, E), k.reshape(B, S, E),
                              v.reshape(B, S, E), p["wo"], p["bo"], n_heads)

        # fused 1x1-conv(+ReLU) + residual add + LayerNorm(channels) -> f32
        x = cnn2_add_layernorm(a.reshape(B * S, E), residual,
                               p["w2"], p["b2"], p["gamma"],
                               p["beta"]).reshape(B, S, C)

    # (B, S, C) -> NCHW
    return jnp.transpose(x.reshape(B, H, W, C), (0, 3, 1, 2))


def encoder_reference(x_nchw, layers, pe_hwc, n_heads):
    """Pure-JAX f32 reference mirroring the PyTorch module semantics."""
    B, C, H, W = x_nchw.shape
    S = H * W
    x = jnp.transpose(x_nchw, (0, 2, 3, 1)).reshape(B, S, C)
    x = x + pe_hwc.reshape(1, S, C)
    for p in layers:
        E = p["w1"].shape[1]
        d_head = E // n_heads
        res = x
        h = jax.nn.relu(x @ p["w1"] + p["b1"])
        q = h @ p["wq"] + p["bq"]
        k = h @ p["wk"] + p["bk"]
        v = h @ p["wv"] + p["bv"]
        split = lambda t: t.reshape(B, S, n_heads, d_head).transpose(0, 2, 1, 3)
        qh, kh, vh = split(q), split(k), split(v)
        s = jnp.einsum("bhqd,bhkd->bhqk", qh, kh) / math.sqrt(d_head)
        pa = jax.nn.softmax(s, axis=-1)
        o = jnp.einsum("bhqk,bhkd->bhqd", pa, vh)
        o = o.transpose(0, 2, 1, 3).reshape(B, S, E)
        a = o @ p["wo"] + p["bo"]
        h2 = jax.nn.relu(a @ p["w2"] + p["b2"])
        y = h2 + res
        mu = y.mean(-1, keepdims=True)
        var = ((y - mu) ** 2).mean(-1, keepdims=True)
        x = (y - mu) / jnp.sqrt(var + 1e-5) * p["gamma"] + p["beta"]
    return jnp.transpose(x.reshape(B, H, W, C), (0, 3, 1, 2))


# ----------------------------------------------------------------------------
if __name__ == "__main__":
    # small shapes consistent with the module (defaults scaled down)
    B, C, H, W = 2, 32, 4, 8          # in_channels=32, height=4, width=8
    d_embed = 64                      # out_channels
    n_heads = 4
    enc_unit = 2

    key = jax.random.PRNGKey(0)
    kx, kp = jax.random.split(key)
    x = jax.random.normal(kx, (B, C, H, W), jnp.float32)

    layers = init_params(kp, C, d_embed, enc_unit)
    pe_hwc = make_pos_encoding(C, H, W)

    fwd = jax.jit(functools.partial(encoder_forward, n_heads=n_heads))
    out = jax.block_until_ready(fwd(x, layers, pe_hwc))

    assert out.shape == (B, C, H, W), out.shape
    assert bool(jnp.all(jnp.isfinite(out)))

    # correctness vs f32 reference (bf16 MXU operands => loose tolerance)
    ref = encoder_reference(x, layers, pe_hwc, n_heads)
    err = float(jnp.max(jnp.abs(out - ref)))
    assert err < 1e-1, f"max abs error {err}"

    print("KERNEL_OK")
</pallas_src>

<mosaic_0001>
module attributes {stable_mosaic.version = 11 : i64} {
  func.func @_add_pe_kernel(%arg0: i32, %arg1: i32, %arg2: memref<1x32x32xf32, #tpu.memory_space<vmem>>, %arg3: memref<32x32xf32, #tpu.memory_space<vmem>>, %arg4: memref<1x32x32xf32, #tpu.memory_space<vmem>>) attributes {dimension_semantics = [#tpu.dimension_semantics<parallel>, #tpu.dimension_semantics<parallel>], iteration_bounds = array<i64: 2, 1>, scalar_prefetch = 0 : i64, scratch_operands = 0 : i64, tpu.core_type = #tpu.core_type<tc>, window_params = [{transform_indices = @transform_0, window_bounds = array<i64: 1, 32, 32>}, {transform_indices = @transform_1, window_bounds = array<i64: 32, 32>}, {transform_indices = @transform_2, window_bounds = array<i64: 1, 32, 32>}]} {
    %c0 = arith.constant 0 : index
    %c0_0 = arith.constant 0 : index
    %c0_1 = arith.constant 0 : index
    %0 = vector.load %arg2[%c0, %c0_0, %c0_1] : memref<1x32x32xf32, #tpu.memory_space<vmem>>, vector<1x32x32xf32>
    %1 = vector.shape_cast %0 : vector<1x32x32xf32> to vector<32x32xf32>
    %c0_2 = arith.constant 0 : index
    %c0_3 = arith.constant 0 : index
    %2 = vector.load %arg3[%c0_2, %c0_3] : memref<32x32xf32, #tpu.memory_space<vmem>>, vector<32x32xf32>
    %3 = arith.addf %1, %2 : vector<32x32xf32>
    %c0_4 = arith.constant 0 : index
    %c0_5 = arith.constant 0 : index
    %c0_6 = arith.constant 0 : index
    %4 = vector.load %arg4[%c0_4, %c0_5, %c0_6] : memref<1x32x32xf32, #tpu.memory_space<vmem>>, vector<1x32x32xf32>
    %5 = vector.shape_cast %4 : vector<1x32x32xf32> to vector<32x32xf32>
    %6 = vector.shape_cast %3 : vector<32x32xf32> to vector<1x32x32xf32>
    tpu.vector_store %arg4[%c0_4, %c0_5, %c0_6], %6 {strides = array<i32>} : memref<1x32x32xf32, #tpu.memory_space<vmem>>, vector<1x32x32xf32>,
    return
  }
  func.func @transform_0(%arg0: i32, %arg1: i32) -> (i32, i32, i32) {
    %c0_i32 = arith.constant 0 : i32
    %c0_i32_0 = arith.constant 0 : i32
    return %arg0, %arg1, %c0_i32 : i32, i32, i32
  }
  func.func @transform_1(%arg0: i32, %arg1: i32) -> (i32, i32) {
    %c0_i32 = arith.constant 0 : i32
    %c0_i32_0 = arith.constant 0 : i32
    return %arg1, %c0_i32 : i32, i32
  }
  func.func @transform_2(%arg0: i32, %arg1: i32) -> (i32, i32, i32) {
    %c0_i32 = arith.constant 0 : i32
    %c0_i32_0 = arith.constant 0 : i32
    return %arg0, %arg1, %c0_i32 : i32, i32, i32
  }
}

module attributes {stable_mosaic.version = 11 : i64} {
  func.func @_attn_outproj_kernel(%arg0: i32, %arg1: i32, %arg2: memref<1x32x64xbf16, #tpu.memory_space<vmem>>, %arg3: memref<1x32x64xbf16, #tpu.memory_space<vmem>>, %arg4: memref<1x32x64xbf16, #tpu.memory_space<vmem>>, %arg5: memref<64x64xbf16, #tpu.memory_space<vmem>>, %arg6: memref<1x64xf32, #tpu.memory_space<vmem>>, %arg7: memref<1x32x64xbf16, #tpu.memory_space<vmem>>) attributes {dimension_semantics = [#tpu.dimension_semantics<parallel>, #tpu.dimension_semantics<parallel>], iteration_bounds = array<i64: 2, 1>, scalar_prefetch = 0 : i64, scratch_operands = 0 : i64, tpu.core_type = #tpu.core_type<tc>, window_params = [{transform_indices = @transform_0, window_bounds = array<i64: 1, 32, 64>}, {transform_indices = @transform_1, window_bounds = array<i64: 1, 32, 64>}, {transform_indices = @transform_2, window_bounds = array<i64: 1, 32, 64>}, {pipeline_mode = #tpu.pipeline_mode<synchronous>, transform_indices = @transform_3, window_bounds = array<i64: 64, 64>}, {pipeline_mode = #tpu.pipeline_mode<synchronous>, transform_indices = @transform_4, window_bounds = array<i64: 1, 64>}, {transform_indices = @transform_5, window_bounds = array<i64: 1, 32, 64>}]} {
    %c0 = arith.constant 0 : index
    %c0_0 = arith.constant 0 : index
    %c0_1 = arith.constant 0 : index
    %0 = vector.load %arg2[%c0, %c0_0, %c0_1] : memref<1x32x64xbf16, #tpu.memory_space<vmem>>, vector<1x32x16xbf16>
    %1 = vector.shape_cast %0 : vector<1x32x16xbf16> to vector<32x16xbf16>
    %cst = arith.constant 2.500000e-01 : bf16
    %2 = vector.broadcast %cst : bf16 to vector<32x16xbf16>
    %3 = arith.mulf %1, %2 : vector<32x16xbf16>
    %c0_2 = arith.constant 0 : index
    %c0_3 = arith.constant 0 : index
    %c0_4 = arith.constant 0 : index
    %4 = vector.load %arg3[%c0_2, %c0_3, %c0_4] : memref<1x32x64xbf16, #tpu.memory_space<vmem>>, vector<1x32x16xbf16>
    %5 = vector.shape_cast %4 : vector<1x32x16xbf16> to vector<32x16xbf16>
    %c0_5 = arith.constant 0 : index
    %c0_6 = arith.constant 0 : index
    %c0_7 = arith.constant 0 : index
    %6 = vector.load %arg4[%c0_5, %c0_6, %c0_7] : memref<1x32x64xbf16, #tpu.memory_space<vmem>>, vector<1x32x16xbf16>
    %7 = vector.shape_cast %6 : vector<1x32x16xbf16> to vector<32x16xbf16>
    %cst_8 = arith.constant dense<0.000000e+00> : vector<32x32xf32>
    %8 = tpu.matmul %3, %5, %cst_8 {dimension_numbers = #tpu.dot_dimension_numbers<[1], [1], [0], [0], [0, 0, 1, 0], [], []>} : vector<32x16xbf16>, vector<32x16xbf16>, vector<32x32xf32> -> vector<32x32xf32>
    %cst_9 = arith.constant dense<0xFF800000> : vector<32xf32>
    %9 = vector.multi_reduction <maximumf>, %8, %cst_9 [1] : vector<32x32xf32> to vector<32xf32>
    %10 = vector.shape_cast %9 : vector<32xf32> to vector<32x1xf32>
    %11 = vector.broadcast %10 : vector<32x1xf32> to vector<32x32xf32>
    %12 = arith.subf %8, %11 : vector<32x32xf32>
    %13 = arith.truncf %12 : vector<32x32xf32> to vector<32x32xbf16>
    %14 = math.exp %13 : vector<32x32xbf16>
    %15 = arith.extf %14 : vector<32x32xbf16> to vector<32x32xf32>
    %cst_10 = arith.constant dense<0.000000e+00> : vector<32xf32>
    %16 = vector.multi_reduction <add>, %15, %cst_10 [1] : vector<32x32xf32> to vector<32xf32>
    %17 = vector.shape_cast %16 : vector<32xf32> to vector<32x1xf32>
    %cst_11 = arith.constant dense<0.000000e+00> : vector<32x16xf32>
    %18 = tpu.matmul %14, %7, %cst_11 {dimension_numbers = #tpu.dot_dimension_numbers<[1], [0], [0], [1], [0, 0, 1, 1], [], []>} : vector<32x32xbf16>, vector<32x16xbf16>, vector<32x16xf32> -> vector<32x16xf32>
    %19 = tpu.reciprocal %17 {approx = true} : vector<32x1xf32> -> vector<32x1xf32>
    %20 = vector.broadcast %19 : vector<32x1xf32> to vector<32x16xf32>
    %21 = arith.mulf %18, %20 : vector<32x16xf32>
    %22 = arith.truncf %21 : vector<32x16xf32> to vector<32x16xbf16>
    %c0_12 = arith.constant 0 : index
    %c0_13 = arith.constant 0 : index
    %c16 = arith.constant 16 : index
    %23 = vector.load %arg2[%c0_12, %c0_13, %c16] : memref<1x32x64xbf16, #tpu.memory_space<vmem>>, vector<1x32x16xbf16>
    %24 = vector.shape_cast %23 : vector<1x32x16xbf16> to vector<32x16xbf16>
    %cst_14 = arith.constant 2.500000e-01 : bf16
    %25 = vector.broadcast %cst_14 : bf16 to vector<32x16xbf16>
    %26 = arith.mulf %24, %25 : vector<32x16xbf16>
    %c0_15 = arith.constant 0 : index
    %c0_16 = arith.constant 0 : index
    %c16_17 = arith.constant 16 : index
    %27 = vector.load %arg3[%c0_15, %c0_16, %c16_17] : memref<1x32x64xbf16, #tpu.memory_space<vmem>>, vector<1x32x16xbf16>
    %28 = vector.shape_cast %27 : vector<1x32x16xbf16> to vector<32x16xbf16>
    %c0_18 = arith.constant 0 : index
    %c0_19 = arith.constant 0 : index
    %c16_20 = arith.constant 16 : index
    %29 = vector.load %arg4[%c0_18, %c0_19, %c16_20] : memref<1x32x64xbf16, #tpu.memory_space<vmem>>, vector<1x32x16xbf16>
    %30 = vector.shape_cast %29 : vector<1x32x16xbf16> to vector<32x16xbf16>
    %cst_21 = arith.constant dense<0.000000e+00> : vector<32x32xf32>
    %31 = tpu.matmul %26, %28, %cst_21 {dimension_numbers = #tpu.dot_dimension_numbers<[1], [1], [0], [0], [0, 0, 1, 0], [], []>} : vector<32x16xbf16>, vector<32x16xbf16>, vector<32x32xf32> -> vector<32x32xf32>
    %cst_22 = arith.constant dense<0xFF800000> : vector<32xf32>
    %32 = vector.multi_reduction <maximumf>, %31, %cst_22 [1] : vector<32x32xf32> to vector<32xf32>
    %33 = vector.shape_cast %32 : vector<32xf32> to vector<32x1xf32>
    %34 = vector.broadcast %33 : vector<32x1xf32> to vector<32x32xf32>
    %35 = arith.subf %31, %34 : vector<32x32xf32>
    %36 = arith.truncf %35 : vector<32x32xf32> to vector<32x32xbf16>
    %37 = math.exp %36 : vector<32x32xbf16>
    %38 = arith.extf %37 : vector<32x32xbf16> to vector<32x32xf32>
    %cst_23 = arith.constant dense<0.000000e+00> : vector<32xf32>
    %39 = vector.multi_reduction <add>, %38, %cst_23 [1] : vector<32x32xf32> to vector<32xf32>
    %40 = vector.shape_cast %39 : vector<32xf32> to vector<32x1xf32>
    %cst_24 = arith.constant dense<0.000000e+00> : vector<32x16xf32>
    %41 = tpu.matmul %37, %30, %cst_24 {dimension_numbers = #tpu.dot_dimension_numbers<[1], [0], [0], [1], [0, 0, 1, 1], [], []>} : vector<32x32xbf16>, vector<32x16xbf16>, vector<32x16xf32> -> vector<32x16xf32>
    %42 = tpu.reciprocal %40 {approx = true} : vector<32x1xf32> -> vector<32x1xf32>
    %43 = vector.broadcast %42 : vector<32x1xf32> to vector<32x16xf32>
    %44 = arith.mulf %41, %43 : vector<32x16xf32>
    %45 = arith.truncf %44 : vector<32x16xf32> to vector<32x16xbf16>
    %c0_25 = arith.constant 0 : index
    %c0_26 = arith.constant 0 : index
    %c32 = arith.constant 32 : index
    %46 = vector.load %arg2[%c0_25, %c0_26, %c32] : memref<1x32x64xbf16, #tpu.memory_space<vmem>>, vector<1x32x16xbf16>
    %47 = vector.shape_cast %46 : vector<1x32x16xbf16> to vector<32x16xbf16>
    %cst_27 = arith.constant 2.500000e-01 : bf16
    %48 = vector.broadcast %cst_27 : bf16 to vector<32x16xbf16>
    %49 = arith.mulf %47, %48 : vector<32x16xbf16>
    %c0_28 = arith.constant 0 : index
    %c0_29 = arith.constant 0 : index
    %c32_30 = arith.constant 32 : index
    %50 = vector.load %arg3[%c0_28, %c0_29, %c32_30] : memref<1x32x64xbf16, #tpu.memory_space<vmem>>, vector<1x32x16xbf16>
    %51 = vector.shape_cast %50 : vector<1x32x16xbf16> to vector<32x16xbf16>
    %c0_31 = arith.constant 0 : index
    %c0_32 = arith.constant 0 : index
    %c32_33 = arith.constant 32 : index
    %52 = vector.load %arg4[%c0_31, %c0_32, %c32_33] : memref<1x32x64xbf16, #tpu.memory_space<vmem>>, vector<1x32x16xbf16>
    %53 = vector.shape_cast %52 : vector<1x32x16xbf16> to vector<32x16xbf16>
    %cst_34 = arith.constant dense<0.000000e+00> : vector<32x32xf32>
    %54 = tpu.matmul %49, %51, %cst_34 {dimension_numbers = #tpu.dot_dimension_numbers<[1], [1], [0], [0], [0, 0, 1, 0], [], []>} : vector<32x16xbf16>, vector<32x16xbf16>, vector<32x32xf32> -> vector<32x32xf32>
    %cst_35 = arith.constant dense<0xFF800000> : vector<32xf32>
    %55 = vector.multi_reduction <maximumf>, %54, %cst_35 [1] : vector<32x32xf32> to vector<32xf32>
    %56 = vector.shape_cast %55 : vector<32xf32> to vector<32x1xf32>
    %57 = vector.broadcast %56 : vector<32x1xf32> to vector<32x32xf32>
    %58 = arith.subf %54, %57 : vector<32x32xf32>
    %59 = arith.truncf %58 : vector<32x32xf32> to vector<32x32xbf16>
    %60 = math.exp %59 : vector<32x32xbf16>
    %61 = arith.extf %60 : vector<32x32xbf16> to vector<32x32xf32>
    %cst_36 = arith.constant dense<0.000000e+00> : vector<32xf32>
    %62 = vector.multi_reduction <add>, %61, %cst_36 [1] : vector<32x32xf32> to vector<32xf32>
    %63 = vector.shape_cast %62 : vector<32xf32> to vector<32x1xf32>
    %cst_37 = arith.constant dense<0.000000e+00> : vector<32x16xf32>
    %64 = tpu.matmul %60, %53, %cst_37 {dimension_numbers = #tpu.dot_dimension_numbers<[1], [0], [0], [1], [0, 0, 1, 1], [], []>} : vector<32x32xbf16>, vector<32x16xbf16>, vector<32x16xf32> -> vector<32x16xf32>
    %65 = tpu.reciprocal %63 {approx = true} : vector<32x1xf32> -> vector<32x1xf32>
    %66 = vector.broadcast %65 : vector<32x1xf32> to vector<32x16xf32>
    %67 = arith.mulf %64, %66 : vector<32x16xf32>
    %68 = arith.truncf %67 : vector<32x16xf32> to vector<32x16xbf16>
    %c0_38 = arith.constant 0 : index
    %c0_39 = arith.constant 0 : index
    %c48 = arith.constant 48 : index
    %69 = vector.load %arg2[%c0_38, %c0_39, %c48] : memref<1x32x64xbf16, #tpu.memory_space<vmem>>, vector<1x32x16xbf16>
    %70 = vector.shape_cast %69 : vector<1x32x16xbf16> to vector<32x16xbf16>
    %cst_40 = arith.constant 2.500000e-01 : bf16
    %71 = vector.broadcast %cst_40 : bf16 to vector<32x16xbf16>
    %72 = arith.mulf %70, %71 : vector<32x16xbf16>
    %c0_41 = arith.constant 0 : index
    %c0_42 = arith.constant 0 : index
    %c48_43 = arith.constant 48 : index
    %73 = vector.load %arg3[%c0_41, %c0_42, %c48_43] : memref<1x32x64xbf16, #tpu.memory_space<vmem>>, vector<1x32x16xbf16>
    %74 = vector.shape_cast %73 : vector<1x32x16xbf16> to vector<32x16xbf16>
    %c0_44 = arith.constant 0 : index
    %c0_45 = arith.constant 0 : index
    %c48_46 = arith.constant 48 : index
    %75 = vector.load %arg4[%c0_44, %c0_45, %c48_46] : memref<1x32x64xbf16, #tpu.memory_space<vmem>>, vector<1x32x16xbf16>
    %76 = vector.shape_cast %75 : vector<1x32x16xbf16> to vector<32x16xbf16>
    %cst_47 = arith.constant dense<0.000000e+00> : vector<32x32xf32>
    %77 = tpu.matmul %72, %74, %cst_47 {dimension_numbers = #tpu.dot_dimension_numbers<[1], [1], [0], [0], [0, 0, 1, 0], [], []>} : vector<32x16xbf16>, vector<32x16xbf16>, vector<32x32xf32> -> vector<32x32xf32>
    %cst_48 = arith.constant dense<0xFF800000> : vector<32xf32>
    %78 = vector.multi_reduction <maximumf>, %77, %cst_48 [1] : vector<32x32xf32> to vector<32xf32>
    %79 = vector.shape_cast %78 : vector<32xf32> to vector<32x1xf32>
    %80 = vector.broadcast %79 : vector<32x1xf32> to vector<32x32xf32>
    %81 = arith.subf %77, %80 : vector<32x32xf32>
    %82 = arith.truncf %81 : vector<32x32xf32> to vector<32x32xbf16>
    %83 = math.exp %82 : vector<32x32xbf16>
    %84 = arith.extf %83 : vector<32x32xbf16> to vector<32x32xf32>
    %cst_49 = arith.constant dense<0.000000e+00> : vector<32xf32>
    %85 = vector.multi_reduction <add>, %84, %cst_49 [1] : vector<32x32xf32> to vector<32xf32>
    %86 = vector.shape_cast %85 : vector<32xf32> to vector<32x1xf32>
    %cst_50 = arith.constant dense<0.000000e+00> : vector<32x16xf32>
    %87 = tpu.matmul %83, %76, %cst_50 {dimension_numbers = #tpu.dot_dimension_numbers<[1], [0], [0], [1], [0, 0, 1, 1], [], []>} : vector<32x32xbf16>, vector<32x16xbf16>, vector<32x16xf32> -> vector<32x16xf32>
    %88 = tpu.reciprocal %86 {approx = true} : vector<32x1xf32> -> vector<32x1xf32>
    %89 = vector.broadcast %88 : vector<32x1xf32> to vector<32x16xf32>
    %90 = arith.mulf %87, %89 : vector<32x16xf32>
    %91 = arith.truncf %90 : vector<32x16xf32> to vector<32x16xbf16>
    %92 = tpu.concatenate %22, %45, %68, %91 in 1 : vector<32x16xbf16>, vector<32x16xbf16>, vector<32x16xbf16>, vector<32x16xbf16> -> vector<32x64xbf16>
    %c0_51 = arith.constant 0 : index
    %c0_52 = arith.constant 0 : index
    %93 = vector.load %arg5[%c0_51, %c0_52] : memref<64x64xbf16, #tpu.memory_space<vmem>>, vector<64x64xbf16>
    %cst_53 = arith.constant dense<0.000000e+00> : vector<32x64xf32>
    %94 = tpu.matmul %92, %93, %cst_53 {dimension_numbers = #tpu.dot_dimension_numbers<[1], [0], [0], [1], [0, 0, 1, 1], [], []>} : vector<32x64xbf16>, vector<64x64xbf16>, vector<32x64xf32> -> vector<32x64xf32>
    %c0_54 = arith.constant 0 : index
    %c0_55 = arith.constant 0 : index
    %95 = vector.load %arg6[%c0_54, %c0_55] : memref<1x64xf32, #tpu.memory_space<vmem>>, vector<1x64xf32>
    %96 = vector.broadcast %95 : vector<1x64xf32> to vector<32x64xf32>
    %97 = arith.addf %94, %96 : vector<32x64xf32>
    %98 = arith.truncf %97 : vector<32x64xf32> to vector<32x64xbf16>
    %c0_56 = arith.constant 0 : index
    %c0_57 = arith.constant 0 : index
    %c0_58 = arith.constant 0 : index
    %99 = vector.load %arg7[%c0_56, %c0_57, %c0_58] : memref<1x32x64xbf16, #tpu.memory_space<vmem>>, vector<1x32x64xbf16>
    %100 = vector.shape_cast %99 : vector<1x32x64xbf16> to vector<32x64xbf16>
    %101 = vector.shape_cast %98 : vector<32x64xbf16> to vector<1x32x64xbf16>
    tpu.vector_store %arg7[%c0_56, %c0_57, %c0_58], %101 {strides = array<i32>} : memref<1x32x64xbf16, #tpu.memory_space<vmem>>, vector<1x32x64xbf16>,
    return
  }
  func.func @transform_0(%arg0: i32, %arg1: i32) -> (i32, i32, i32) {
    %c0_i32 = arith.constant 0 : i32
    %c0_i32_0 = arith.constant 0 : i32
    return %arg0, %arg1, %c0_i32 : i32, i32, i32
  }
  func.func @transform_1(%arg0: i32, %arg1: i32) -> (i32, i32, i32) {
    %c0_i32 = arith.constant 0 : i32
    %c0_i32_0 = arith.constant 0 : i32
    %c0_i32_1 = arith.constant 0 : i32
    return %arg0, %c0_i32, %c0_i32_0 : i32, i32, i32
  }
  func.func @transform_2(%arg0: i32, %arg1: i32) -> (i32, i32, i32) {
    %c0_i32 = arith.constant 0 : i32
    %c0_i32_0 = arith.constant 0 : i32
    %c0_i32_1 = arith.constant 0 : i32
    return %arg0, %c0_i32, %c0_i32_0 : i32, i32, i32
  }
  func.func @transform_3(%arg0: i32, %arg1: i32) -> (i32, i32) {
    %c0_i32 = arith.constant 0 : i32
    %c0_i32_0 = arith.constant 0 : i32
    %c0_i32_1 = arith.constant 0 : i32
    return %c0_i32, %c0_i32_0 : i32, i32
  }
  func.func @transform_4(%arg0: i32, %arg1: i32) -> (i32, i32) {
    %c0_i32 = arith.constant 0 : i32
    %c0_i32_0 = arith.constant 0 : i32
    %c0_i32_1 = arith.constant 0 : i32
    return %c0_i32, %c0_i32_0 : i32, i32
  }
  func.func @transform_5(%arg0: i32, %arg1: i32) -> (i32, i32, i32) {
    %c0_i32 = arith.constant 0 : i32
    %c0_i32_0 = arith.constant 0 : i32
    return %arg0, %arg1, %c0_i32 : i32, i32, i32
  }
}

module attributes {stable_mosaic.version = 11 : i64} {
  func.func @_cnn1_qkv_kernel(%arg0: i32, %arg1: memref<64x32xf32, #tpu.memory_space<vmem>>, %arg2: memref<32x64xbf16, #tpu.memory_space<vmem>>, %arg3: memref<1x64xf32, #tpu.memory_space<vmem>>, %arg4: memref<64x64xbf16, #tpu.memory_space<vmem>>, %arg5: memref<1x64xf32, #tpu.memory_space<vmem>>, %arg6: memref<64x64xbf16, #tpu.memory_space<vmem>>, %arg7: memref<1x64xf32, #tpu.memory_space<vmem>>, %arg8: memref<64x64xbf16, #tpu.memory_space<vmem>>, %arg9: memref<1x64xf32, #tpu.memory_space<vmem>>, %arg10: memref<64x64xbf16, #tpu.memory_space<vmem>>, %arg11: memref<64x64xbf16, #tpu.memory_space<vmem>>, %arg12: memref<64x64xbf16, #tpu.memory_space<vmem>>) attributes {dimension_semantics = [#tpu.dimension_semantics<parallel>], iteration_bounds = array<i64: 1>, scalar_prefetch = 0 : i64, scratch_operands = 0 : i64, tpu.core_type = #tpu.core_type<tc>, window_params = [{transform_indices = @transform_0, window_bounds = array<i64: 64, 32>}, {pipeline_mode = #tpu.pipeline_mode<synchronous>, transform_indices = @transform_1, window_bounds = array<i64: 32, 64>}, {pipeline_mode = #tpu.pipeline_mode<synchronous>, transform_indices = @transform_2, window_bounds = array<i64: 1, 64>}, {pipeline_mode = #tpu.pipeline_mode<synchronous>, transform_indices = @transform_3, window_bounds = array<i64: 64, 64>}, {pipeline_mode = #tpu.pipeline_mode<synchronous>, transform_indices = @transform_4, window_bounds = array<i64: 1, 64>}, {pipeline_mode = #tpu.pipeline_mode<synchronous>, transform_indices = @transform_5, window_bounds = array<i64: 64, 64>}, {pipeline_mode = #tpu.pipeline_mode<synchronous>, transform_indices = @transform_6, window_bounds = array<i64: 1, 64>}, {pipeline_mode = #tpu.pipeline_mode<synchronous>, transform_indices = @transform_7, window_bounds = array<i64: 64, 64>}, {pipeline_mode = #tpu.pipeline_mode<synchronous>, transform_indices = @transform_8, window_bounds = array<i64: 1, 64>}, {transform_indices = @transform_9, window_bounds = array<i64: 64, 64>}, {transform_indices = @transform_10, window_bounds = array<i64: 64, 64>}, {transform_indices = @transform_11, window_bounds = array<i64: 64, 64>}]} {
    %c0 = arith.constant 0 : index
    %c0_0 = arith.constant 0 : index
    %0 = vector.load %arg1[%c0, %c0_0] : memref<64x32xf32, #tpu.memory_space<vmem>>, vector<64x32xf32>
    %1 = arith.truncf %0 : vector<64x32xf32> to vector<64x32xbf16>
    %c0_1 = arith.constant 0 : index
    %c0_2 = arith.constant 0 : index
    %2 = vector.load %arg2[%c0_1, %c0_2] : memref<32x64xbf16, #tpu.memory_space<vmem>>, vector<32x64xbf16>
    %cst = arith.constant dense<0.000000e+00> : vector<64x64xf32>
    %3 = tpu.matmul %1, %2, %cst {dimension_numbers = #tpu.dot_dimension_numbers<[1], [0], [0], [1], [0, 0, 1, 1], [], []>} : vector<64x32xbf16>, vector<32x64xbf16>, vector<64x64xf32> -> vector<64x64xf32>
    %c0_3 = arith.constant 0 : index
    %c0_4 = arith.constant 0 : index
    %4 = vector.load %arg3[%c0_3, %c0_4] : memref<1x64xf32, #tpu.memory_space<vmem>>, vector<1x64xf32>
    %5 = vector.broadcast %4 : vector<1x64xf32> to vector<64x64xf32>
    %6 = arith.addf %3, %5 : vector<64x64xf32>
    %cst_5 = arith.constant 0.000000e+00 : f32
    %7 = vector.broadcast %cst_5 : f32 to vector<64x64xf32>
    %8 = arith.maximumf %6, %7 : vector<64x64xf32>
    %9 = arith.truncf %8 : vector<64x64xf32> to vector<64x64xbf16>
    %c0_6 = arith.constant 0 : index
    %c0_7 = arith.constant 0 : index
    %10 = vector.load %arg4[%c0_6, %c0_7] : memref<64x64xbf16, #tpu.memory_space<vmem>>, vector<64x64xbf16>
    %cst_8 = arith.constant dense<0.000000e+00> : vector<64x64xf32>
    %11 = tpu.matmul %9, %10, %cst_8 {dimension_numbers = #tpu.dot_dimension_numbers<[1], [0], [0], [1], [0, 0, 1, 1], [], []>} : vector<64x64xbf16>, vector<64x64xbf16>, vector<64x64xf32> -> vector<64x64xf32>
    %c0_9 = arith.constant 0 : index
    %c0_10 = arith.constant 0 : index
    %12 = vector.load %arg5[%c0_9, %c0_10] : memref<1x64xf32, #tpu.memory_space<vmem>>, vector<1x64xf32>
    %13 = vector.broadcast %12 : vector<1x64xf32> to vector<64x64xf32>
    %14 = arith.addf %11, %13 : vector<64x64xf32>
    %15 = arith.truncf %14 : vector<64x64xf32> to vector<64x64xbf16>
    %c0_11 = arith.constant 0 : index
    %c0_12 = arith.constant 0 : index
    %16 = vector.load %arg10[%c0_11, %c0_12] : memref<64x64xbf16, #tpu.memory_space<vmem>>, vector<64x64xbf16>
    tpu.vector_store %arg10[%c0_11, %c0_12], %15 {strides = array<i32>} : memref<64x64xbf16, #tpu.memory_space<vmem>>, vector<64x64xbf16>,
    %c0_13 = arith.constant 0 : index
    %c0_14 = arith.constant 0 : index
    %17 = vector.load %arg6[%c0_13, %c0_14] : memref<64x64xbf16, #tpu.memory_space<vmem>>, vector<64x64xbf16>
    %cst_15 = arith.constant dense<0.000000e+00> : vector<64x64xf32>
    %18 = tpu.matmul %9, %17, %cst_15 {dimension_numbers = #tpu.dot_dimension_numbers<[1], [0], [0], [1], [0, 0, 1, 1], [], []>} : vector<64x64xbf16>, vector<64x64xbf16>, vector<64x64xf32> -> vector<64x64xf32>
    %c0_16 = arith.constant 0 : index
    %c0_17 = arith.constant 0 : index
    %19 = vector.load %arg7[%c0_16, %c0_17] : memref<1x64xf32, #tpu.memory_space<vmem>>, vector<1x64xf32>
    %20 = vector.broadcast %19 : vector<1x64xf32> to vector<64x64xf32>
    %21 = arith.addf %18, %20 : vector<64x64xf32>
    %22 = arith.truncf %21 : vector<64x64xf32> to vector<64x64xbf16>
    %c0_18 = arith.constant 0 : index
    %c0_19 = arith.constant 0 : index
    %23 = vector.load %arg11[%c0_18, %c0_19] : memref<64x64xbf16, #tpu.memory_space<vmem>>, vector<64x64xbf16>
    tpu.vector_store %arg11[%c0_18, %c0_19], %22 {strides = array<i32>} : memref<64x64xbf16, #tpu.memory_space<vmem>>, vector<64x64xbf16>,
    %c0_20 = arith.constant 0 : index
    %c0_21 = arith.constant 0 : index
    %24 = vector.load %arg8[%c0_20, %c0_21] : memref<64x64xbf16, #tpu.memory_space<vmem>>, vector<64x64xbf16>
    %cst_22 = arith.constant dense<0.000000e+00> : vector<64x64xf32>
    %25 = tpu.matmul %9, %24, %cst_22 {dimension_numbers = #tpu.dot_dimension_numbers<[1], [0], [0], [1], [0, 0, 1, 1], [], []>} : vector<64x64xbf16>, vector<64x64xbf16>, vector<64x64xf32> -> vector<64x64xf32>
    %c0_23 = arith.constant 0 : index
    %c0_24 = arith.constant 0 : index
    %26 = vector.load %arg9[%c0_23, %c0_24] : memref<1x64xf32, #tpu.memory_space<vmem>>, vector<1x64xf32>
    %27 = vector.broadcast %26 : vector<1x64xf32> to vector<64x64xf32>
    %28 = arith.addf %25, %27 : vector<64x64xf32>
    %29 = arith.truncf %28 : vector<64x64xf32> to vector<64x64xbf16>
    %c0_25 = arith.constant 0 : index
    %c0_26 = arith.constant 0 : index
    %30 = vector.load %arg12[%c0_25, %c0_26] : memref<64x64xbf16, #tpu.memory_space<vmem>>, vector<64x64xbf16>
    tpu.vector_store %arg12[%c0_25, %c0_26], %29 {strides = array<i32>} : memref<64x64xbf16, #tpu.memory_space<vmem>>, vector<64x64xbf16>,
    return
  }
  func.func @transform_0(%arg0: i32) -> (i32, i32) {
    %c0_i32 = arith.constant 0 : i32
    %c0_i32_0 = arith.constant 0 : i32
    return %arg0, %c0_i32 : i32, i32
  }
  func.func @transform_1(%arg0: i32) -> (i32, i32) {
    %c0_i32 = arith.constant 0 : i32
    %c0_i32_0 = arith.constant 0 : i32
    %c0_i32_1 = arith.constant 0 : i32
    return %c0_i32, %c0_i32_0 : i32, i32
  }
  func.func @transform_2(%arg0: i32) -> (i32, i32) {
    %c0_i32 = arith.constant 0 : i32
    %c0_i32_0 = arith.constant 0 : i32
    %c0_i32_1 = arith.constant 0 : i32
    return %c0_i32, %c0_i32_0 : i32, i32
  }
  func.func @transform_3(%arg0: i32) -> (i32, i32) {
    %c0_i32 = arith.constant 0 : i32
    %c0_i32_0 = arith.constant 0 : i32
    %c0_i32_1 = arith.constant 0 : i32
    return %c0_i32, %c0_i32_0 : i32, i32
  }
  func.func @transform_4(%arg0: i32) -> (i32, i32) {
    %c0_i32 = arith.constant 0 : i32
    %c0_i32_0 = arith.constant 0 : i32
    %c0_i32_1 = arith.constant 0 : i32
    return %c0_i32, %c0_i32_0 : i32, i32
  }
  func.func @transform_5(%arg0: i32) -> (i32, i32) {
    %c0_i32 = arith.constant 0 : i32
    %c0_i32_0 = arith.constant 0 : i32
    %c0_i32_1 = arith.constant 0 : i32
    return %c0_i32, %c0_i32_0 : i32, i32
  }
  func.func @transform_6(%arg0: i32) -> (i32, i32) {
    %c0_i32 = arith.constant 0 : i32
    %c0_i32_0 = arith.constant 0 : i32
    %c0_i32_1 = arith.constant 0 : i32
    return %c0_i32, %c0_i32_0 : i32, i32
  }
  func.func @transform_7(%arg0: i32) -> (i32, i32) {
    %c0_i32 = arith.constant 0 : i32
    %c0_i32_0 = arith.constant 0 : i32
    %c0_i32_1 = arith.constant 0 : i32
    return %c0_i32, %c0_i32_0 : i32, i32
  }
  func.func @transform_8(%arg0: i32) -> (i32, i32) {
    %c0_i32 = arith.constant 0 : i32
    %c0_i32_0 = arith.constant 0 : i32
    %c0_i32_1 = arith.constant 0 : i32
    return %c0_i32, %c0_i32_0 : i32, i32
  }
  func.func @transform_9(%arg0: i32) -> (i32, i32) {
    %c0_i32 = arith.constant 0 : i32
    %c0_i32_0 = arith.constant 0 : i32
    return %arg0, %c0_i32 : i32, i32
  }
  func.func @transform_10(%arg0: i32) -> (i32, i32) {
    %c0_i32 = arith.constant 0 : i32
    %c0_i32_0 = arith.constant 0 : i32
    return %arg0, %c0_i32 : i32, i32
  }
  func.func @transform_11(%arg0: i32) -> (i32, i32) {
    %c0_i32 = arith.constant 0 : i32
    %c0_i32_0 = arith.constant 0 : i32
    return %arg0, %c0_i32 : i32, i32
  }
}

module attributes {stable_mosaic.version = 11 : i64} {
  func.func @_cnn2_addln_kernel(%arg0: i32, %arg1: memref<64x64xbf16, #tpu.memory_space<vmem>>, %arg2: memref<64x32xf32, #tpu.memory_space<vmem>>, %arg3: memref<64x32xbf16, #tpu.memory_space<vmem>>, %arg4: memref<1x32xf32, #tpu.memory_space<vmem>>, %arg5: memref<1x32xf32, #tpu.memory_space<vmem>>, %arg6: memref<1x32xf32, #tpu.memory_space<vmem>>, %arg7: memref<64x32xf32, #tpu.memory_space<vmem>>) attributes {dimension_semantics = [#tpu.dimension_semantics<parallel>], iteration_bounds = array<i64: 1>, scalar_prefetch = 0 : i64, scratch_operands = 0 : i64, tpu.core_type = #tpu.core_type<tc>, window_params = [{transform_indices = @transform_0, window_bounds = array<i64: 64, 64>}, {transform_indices = @transform_1, window_bounds = array<i64: 64, 32>}, {pipeline_mode = #tpu.pipeline_mode<synchronous>, transform_indices = @transform_2, window_bounds = array<i64: 64, 32>}, {pipeline_mode = #tpu.pipeline_mode<synchronous>, transform_indices = @transform_3, window_bounds = array<i64: 1, 32>}, {pipeline_mode = #tpu.pipeline_mode<synchronous>, transform_indices = @transform_4, window_bounds = array<i64: 1, 32>}, {pipeline_mode = #tpu.pipeline_mode<synchronous>, transform_indices = @transform_5, window_bounds = array<i64: 1, 32>}, {transform_indices = @transform_6, window_bounds = array<i64: 64, 32>}]} {
    %c0 = arith.constant 0 : index
    %c0_0 = arith.constant 0 : index
    %0 = vector.load %arg1[%c0, %c0_0] : memref<64x64xbf16, #tpu.memory_space<vmem>>, vector<64x64xbf16>
    %c0_1 = arith.constant 0 : index
    %c0_2 = arith.constant 0 : index
    %1 = vector.load %arg3[%c0_1, %c0_2] : memref<64x32xbf16, #tpu.memory_space<vmem>>, vector<64x32xbf16>
    %cst = arith.constant dense<0.000000e+00> : vector<64x32xf32>
    %2 = tpu.matmul %0, %1, %cst {dimension_numbers = #tpu.dot_dimension_numbers<[1], [0], [0], [1], [0, 0, 1, 1], [], []>} : vector<64x64xbf16>, vector<64x32xbf16>, vector<64x32xf32> -> vector<64x32xf32>
    %c0_3 = arith.constant 0 : index
    %c0_4 = arith.constant 0 : index
    %3 = vector.load %arg4[%c0_3, %c0_4] : memref<1x32xf32, #tpu.memory_space<vmem>>, vector<1x32xf32>
    %4 = vector.broadcast %3 : vector<1x32xf32> to vector<64x32xf32>
    %5 = arith.addf %2, %4 : vector<64x32xf32>
    %cst_5 = arith.constant 0.000000e+00 : f32
    %6 = vector.broadcast %cst_5 : f32 to vector<64x32xf32>
    %7 = arith.maximumf %5, %6 : vector<64x32xf32>
    %c0_6 = arith.constant 0 : index
    %c0_7 = arith.constant 0 : index
    %8 = vector.load %arg2[%c0_6, %c0_7] : memref<64x32xf32, #tpu.memory_space<vmem>>, vector<64x32xf32>
    %9 = arith.addf %7, %8 : vector<64x32xf32>
    %cst_8 = arith.constant dense<0.000000e+00> : vector<64xf32>
    %10 = vector.multi_reduction <add>, %9, %cst_8 [1] : vector<64x32xf32> to vector<64xf32>
    %11 = vector.shape_cast %10 : vector<64xf32> to vector<64x1xf32>
    %cst_9 = arith.constant 3.200000e+01 : f32
    %12 = vector.broadcast %cst_9 : f32 to vector<64x1xf32>
    %13 = arith.divf %11, %12 : vector<64x1xf32>
    %14 = vector.broadcast %13 : vector<64x1xf32> to vector<64x32xf32>
    %15 = arith.subf %9, %14 : vector<64x32xf32>
    %16 = vector.broadcast %13 : vector<64x1xf32> to vector<64x32xf32>
    %17 = arith.subf %9, %16 : vector<64x32xf32>
    %18 = arith.mulf %15, %17 : vector<64x32xf32>
    %cst_10 = arith.constant dense<0.000000e+00> : vector<64xf32>
    %19 = vector.multi_reduction <add>, %18, %cst_10 [1] : vector<64x32xf32> to vector<64xf32>
    %20 = vector.shape_cast %19 : vector<64xf32> to vector<64x1xf32>
    %cst_11 = arith.constant 3.200000e+01 : f32
    %21 = vector.broadcast %cst_11 : f32 to vector<64x1xf32>
    %22 = arith.divf %20, %21 : vector<64x1xf32>
    %23 = vector.broadcast %13 : vector<64x1xf32> to vector<64x32xf32>
    %24 = arith.subf %9, %23 : vector<64x32xf32>
    %cst_12 = arith.constant 9.99999974E-6 : f32
    %25 = vector.broadcast %cst_12 : f32 to vector<64x1xf32>
    %26 = arith.addf %22, %25 : vector<64x1xf32>
    %27 = math.rsqrt %26 : vector<64x1xf32>
    %28 = vector.broadcast %27 : vector<64x1xf32> to vector<64x32xf32>
    %29 = arith.mulf %24, %28 : vector<64x32xf32>
    %c0_13 = arith.constant 0 : index
    %c0_14 = arith.constant 0 : index
    %30 = vector.load %arg5[%c0_13, %c0_14] : memref<1x32xf32, #tpu.memory_space<vmem>>, vector<1x32xf32>
    %31 = vector.broadcast %30 : vector<1x32xf32> to vector<64x32xf32>
    %32 = arith.mulf %29, %31 : vector<64x32xf32>
    %c0_15 = arith.constant 0 : index
    %c0_16 = arith.constant 0 : index
    %33 = vector.load %arg6[%c0_15, %c0_16] : memref<1x32xf32, #tpu.memory_space<vmem>>, vector<1x32xf32>
    %34 = vector.broadcast %33 : vector<1x32xf32> to vector<64x32xf32>
    %35 = arith.addf %32, %34 : vector<64x32xf32>
    %c0_17 = arith.constant 0 : index
    %c0_18 = arith.constant 0 : index
    %36 = vector.load %arg7[%c0_17, %c0_18] : memref<64x32xf32, #tpu.memory_space<vmem>>, vector<64x32xf32>
    tpu.vector_store %arg7[%c0_17, %c0_18], %35 {strides = array<i32>} : memref<64x32xf32, #tpu.memory_space<vmem>>, vector<64x32xf32>,
    return
  }
  func.func @transform_0(%arg0: i32) -> (i32, i32) {
    %c0_i32 = arith.constant 0 : i32
    %c0_i32_0 = arith.constant 0 : i32
    return %arg0, %c0_i32 : i32, i32
  }
  func.func @transform_1(%arg0: i32) -> (i32, i32) {
    %c0_i32 = arith.constant 0 : i32
    %c0_i32_0 = arith.constant 0 : i32
    return %arg0, %c0_i32 : i32, i32
  }
  func.func @transform_2(%arg0: i32) -> (i32, i32) {
    %c0_i32 = arith.constant 0 : i32
    %c0_i32_0 = arith.constant 0 : i32
    %c0_i32_1 = arith.constant 0 : i32
    return %c0_i32, %c0_i32_0 : i32, i32
  }
  func.func @transform_3(%arg0: i32) -> (i32, i32) {
    %c0_i32 = arith.constant 0 : i32
    %c0_i32_0 = arith.constant 0 : i32
    %c0_i32_1 = arith.constant 0 : i32
    return %c0_i32, %c0_i32_0 : i32, i32
  }
  func.func @transform_4(%arg0: i32) -> (i32, i32) {
    %c0_i32 = arith.constant 0 : i32
    %c0_i32_0 = arith.constant 0 : i32
    %c0_i32_1 = arith.constant 0 : i32
    return %c0_i32, %c0_i32_0 : i32, i32
  }
  func.func @transform_5(%arg0: i32) -> (i32, i32) {
    %c0_i32 = arith.constant 0 : i32
    %c0_i32_0 = arith.constant 0 : i32
    %c0_i32_1 = arith.constant 0 : i32
    return %c0_i32, %c0_i32_0 : i32, i32
  }
  func.func @transform_6(%arg0: i32) -> (i32, i32) {
    %c0_i32 = arith.constant 0 : i32
    %c0_i32_0 = arith.constant 0 : i32
    return %arg0, %c0_i32 : i32, i32
  }
}

module attributes {stable_mosaic.version = 11 : i64} {
  func.func @_cnn2_addln_kernel(%arg0: i32, %arg1: memref<64x64xbf16, #tpu.memory_space<vmem>>, %arg2: memref<64x32xf32, #tpu.memory_space<vmem>>, %arg3: memref<64x32xbf16, #tpu.memory_space<vmem>>, %arg4: memref<1x32xf32, #tpu.memory_space<vmem>>, %arg5: memref<1x32xf32, #tpu.memory_space<vmem>>, %arg6: memref<1x32xf32, #tpu.memory_space<vmem>>, %arg7: memref<64x32xf32, #tpu.memory_space<vmem>>) attributes {dimension_semantics = [#tpu.dimension_semantics<parallel>], iteration_bounds = array<i64: 1>, scalar_prefetch = 0 : i64, scratch_operands = 0 : i64, tpu.core_type = #tpu.core_type<tc>, window_params = [{transform_indices = @transform_0, window_bounds = array<i64: 64, 64>}, {transform_indices = @transform_1, window_bounds = array<i64: 64, 32>}, {pipeline_mode = #tpu.pipeline_mode<synchronous>, transform_indices = @transform_2, window_bounds = array<i64: 64, 32>}, {pipeline_mode = #tpu.pipeline_mode<synchronous>, transform_indices = @transform_3, window_bounds = array<i64: 1, 32>}, {pipeline_mode = #tpu.pipeline_mode<synchronous>, transform_indices = @transform_4, window_bounds = array<i64: 1, 32>}, {pipeline_mode = #tpu.pipeline_mode<synchronous>, transform_indices = @transform_5, window_bounds = array<i64: 1, 32>}, {transform_indices = @transform_6, window_bounds = array<i64: 64, 32>}]} {
    %c0 = arith.constant 0 : index
    %c0_0 = arith.constant 0 : index
    %0 = vector.load %arg1[%c0, %c0_0] : memref<64x64xbf16, #tpu.memory_space<vmem>>, vector<64x64xbf16>
    %c0_1 = arith.constant 0 : index
    %c0_2 = arith.constant 0 : index
    %1 = vector.load %arg3[%c0_1, %c0_2] : memref<64x32xbf16, #tpu.memory_space<vmem>>, vector<64x32xbf16>
    %cst = arith.constant dense<0.000000e+00> : vector<64x32xf32>
    %2 = tpu.matmul %0, %1, %cst {dimension_numbers = #tpu.dot_dimension_numbers<[1], [0], [0], [1], [0, 0, 1, 1], [], []>} : vector<64x64xbf16>, vector<64x32xbf16>, vector<64x32xf32> -> vector<64x32xf32>
    %c0_3 = arith.constant 0 : index
    %c0_4 = arith.constant 0 : index
    %3 = vector.load %arg4[%c0_3, %c0_4] : memref<1x32xf32, #tpu.memory_space<vmem>>, vector<1x32xf32>
    %4 = vector.broadcast %3 : vector<1x32xf32> to vector<64x32xf32>
    %5 = arith.addf %2, %4 : vector<64x32xf32>
    %cst_5 = arith.constant 0.000000e+00 : f32
    %6 = vector.broadcast %cst_5 : f32 to vector<64x32xf32>
    %7 = arith.maximumf %5, %6 : vector<64x32xf32>
    %c0_6 = arith.constant 0 : index
    %c0_7 = arith.constant 0 : index
    %8 = vector.load %arg2[%c0_6, %c0_7] : memref<64x32xf32, #tpu.memory_space<vmem>>, vector<64x32xf32>
    %9 = arith.addf %7, %8 : vector<64x32xf32>
    %cst_8 = arith.constant dense<0.000000e+00> : vector<64xf32>
    %10 = vector.multi_reduction <add>, %9, %cst_8 [1] : vector<64x32xf32> to vector<64xf32>
    %11 = vector.shape_cast %10 : vector<64xf32> to vector<64x1xf32>
    %cst_9 = arith.constant 3.200000e+01 : f32
    %12 = vector.broadcast %cst_9 : f32 to vector<64x1xf32>
    %13 = arith.divf %11, %12 : vector<64x1xf32>
    %14 = vector.broadcast %13 : vector<64x1xf32> to vector<64x32xf32>
    %15 = arith.subf %9, %14 : vector<64x32xf32>
    %16 = vector.broadcast %13 : vector<64x1xf32> to vector<64x32xf32>
    %17 = arith.subf %9, %16 : vector<64x32xf32>
    %18 = arith.mulf %15, %17 : vector<64x32xf32>
    %cst_10 = arith.constant dense<0.000000e+00> : vector<64xf32>
    %19 = vector.multi_reduction <add>, %18, %cst_10 [1] : vector<64x32xf32> to vector<64xf32>
    %20 = vector.shape_cast %19 : vector<64xf32> to vector<64x1xf32>
    %cst_11 = arith.constant 3.200000e+01 : f32
    %21 = vector.broadcast %cst_11 : f32 to vector<64x1xf32>
    %22 = arith.divf %20, %21 : vector<64x1xf32>
    %23 = vector.broadcast %13 : vector<64x1xf32> to vector<64x32xf32>
    %24 = arith.subf %9, %23 : vector<64x32xf32>
    %cst_12 = arith.constant 9.99999974E-6 : f32
    %25 = vector.broadcast %cst_12 : f32 to vector<64x1xf32>
    %26 = arith.addf %22, %25 : vector<64x1xf32>
    %27 = math.rsqrt %26 : vector<64x1xf32>
    %28 = vector.broadcast %27 : vector<64x1xf32> to vector<64x32xf32>
    %29 = arith.mulf %24, %28 : vector<64x32xf32>
    %c0_13 = arith.constant 0 : index
    %c0_14 = arith.constant 0 : index
    %30 = vector.load %arg5[%c0_13, %c0_14] : memref<1x32xf32, #tpu.memory_space<vmem>>, vector<1x32xf32>
    %31 = vector.broadcast %30 : vector<1x32xf32> to vector<64x32xf32>
    %32 = arith.mulf %29, %31 : vector<64x32xf32>
    %c0_15 = arith.constant 0 : index
    %c0_16 = arith.constant 0 : index
    %33 = vector.load %arg6[%c0_15, %c0_16] : memref<1x32xf32, #tpu.memory_space<vmem>>, vector<1x32xf32>
    %34 = vector.broadcast %33 : vector<1x32xf32> to vector<64x32xf32>
    %35 = arith.addf %32, %34 : vector<64x32xf32>
    %c0_17 = arith.constant 0 : index
    %c0_18 = arith.constant 0 : index
    %36 = vector.load %arg7[%c0_17, %c0_18] : memref<64x32xf32, #tpu.memory_space<vmem>>, vector<64x32xf32>
    tpu.vector_store %arg7[%c0_17, %c0_18], %35 {strides = array<i32>} : memref<64x32xf32, #tpu.memory_space<vmem>>, vector<64x32xf32>,
    return
  }
  func.func @transform_0(%arg0: i32) -> (i32, i32) {
    %c0_i32 = arith.constant 0 : i32
    %c0_i32_0 = arith.constant 0 : i32
    return %arg0, %c0_i32 : i32, i32
  }
  func.func @transform_1(%arg0: i32) -> (i32, i32) {
    %c0_i32 = arith.constant 0 : i32
    %c0_i32_0 = arith.constant 0 : i32
    return %arg0, %c0_i32 : i32, i32
  }
  func.func @transform_2(%arg0: i32) -> (i32, i32) {
    %c0_i32 = arith.constant 0 : i32
    %c0_i32_0 = arith.constant 0 : i32
    %c0_i32_1 = arith.constant 0 : i32
    return %c0_i32, %c0_i32_0 : i32, i32
  }
  func.func @transform_3(%arg0: i32) -> (i32, i32) {
    %c0_i32 = arith.constant 0 : i32
    %c0_i32_0 = arith.constant 0 : i32
    %c0_i32_1 = arith.constant 0 : i32
    return %c0_i32, %c0_i32_0 : i32, i32
  }
  func.func @transform_4(%arg0: i32) -> (i32, i32) {
    %c0_i32 = arith.constant 0 : i32
    %c0_i32_0 = arith.constant 0 : i32
    %c0_i32_1 = arith.constant 0 : i32
    return %c0_i32, %c0_i32_0 : i32, i32
  }
  func.func @transform_5(%arg0: i32) -> (i32, i32) {
    %c0_i32 = arith.constant 0 : i32
    %c0_i32_0 = arith.constant 0 : i32
    %c0_i32_1 = arith.constant 0 : i32
    return %c0_i32, %c0_i32_0 : i32, i32
  }
  func.func @transform_6(%arg0: i32) -> (i32, i32) {
    %c0_i32 = arith.constant 0 : i32
    %c0_i32_0 = arith.constant 0 : i32
    return %arg0, %c0_i32 : i32, i32
  }
}

</mosaic_0001>

<bundles_post_ra>
// kernel: encoder_forward.7
= control target key start
LH: loop header
LB: loop body
LE: loop exit
PB: predicated region body
PF: predicated region fallthrough
CT: control target
= control target key end

     0   :  { %7 = vsyncpa [#allocation3], 0  ;;  %s674_s0 = inlined_call_operand.hbm [shape: f32[2,32,32], index: 0, kind: input, shape index: {}]   ;;  %s675_s1 = inlined_call_operand.hbm [shape: f32[32,32], index: 1, kind: input, shape index: {}]   ;;  %s676_s2 = inlined_call_operand.vmem [shape: f32[2,32,32], index: 2, kind: output, shape index: {}]  }
   0x1   :  { %9 = vsyncpa [#allocation3 + $0x1], 0 }
   0x2   :  { %10 = vsyncpa [#allocation5], 0  ;;  %s563_s9 = smov 0   ;;  %s565_s10 = smov 0  }
   0x3   :  { %s567_s11 = smov 0   ;;  %s569_s12 = smov 0  }
   0x4   :  { %s571_s13 = smov 0   ;;  %s573_s14 = smov 0  }
   0x5 LB: > { %s344_s15 = sadd.s32 4294967295, %s543_s14   ;;  %p50_p0 = scmp.ne.s32.totalorder %s527_s10, %s523_s9  ;;  %s543_s14 = sphi %s573_s14, %s16_s14   ;;  %s539_s13 = sphi %s571_s13, %s685_s13   ;;  %s535_s12 = sphi %s569_s12, %s684_s12   ;;  %s531_s11 = sphi %s567_s11, %s683_s11   ;;  %s527_s10 = sphi %s565_s10, %s682_s10   ;;  %s523_s9 = sphi %s563_s9, %s681_s9  }
   0x6   : > { %p593_p1 = scmp.eq.s32.totalorder %s344_s15, 0  ;;  %p346_p2 = scmp.ge.s32.totalorder %s543_s14, 1 }
   0x7   : > { %p115_p3 = scmp.lt.s32.totalorder %s543_s14, 3  ;;  %s129_s20 = sshll.u32 %s675_s1, 4  ;;  %s130_s20 = int_to_ptr.hbm [resolvable:$true] %s129_s20 }
   0x8   : > { %p601_p4 = por %p593_p1, %p50_p0  ;;  %s545_s22 = smov [#allocation4]  }
   0x9   : > { %p608_p5 = pnand %p346_p2, %p115_p3  ;;  %s131_s23 = sshll.u32 %s545_s22, 4  ;;  %s132_s23 = int_to_ptr.vmem [resolvable:$true] %s131_s23 }
   0xa   : > { %s546_s24 = smov 128   ;;  %s547_s25 = smov 8  }
   0xb   : > { %p367_p6 = pneg %p608_p5  ;;  %s28_s26 = sadd.s32 1, %s539_s13 }
   0xc   : > { %p30_p8 = scmp.ge.s32.totalorder %s28_s26, 2  ;;  %p44_p9 = scmp.ne.s32.totalorder %s531_s11, %s527_s10 }
   0xd   : > { %p368_p7 = pnand %p367_p6, %p593_p1  ;;  %p45_p10 = scmp.eq.s32.totalorder %s543_s14, 0 }
   0xe   : > { %s687_s26 = smov (%p30_p8, %s28_s26), 0  ;;  %s37_s27 = sadd.s32 1, %s531_s11 }
   0xf   : > { %370 = dma.hbm_to_vmem [thread:$0]  (!%p368_p7), %s130_s20, 512, %s132_s23, [#allocation5], %s546_s24, %s546_s24, %s547_s25  }
  0x10   : > { %p623_p11 = por %p45_p10, %p44_p9  ;;  %s32_s29 = ssub.s32 %s539_s13, %s687_s26 }
  0x11   : > { %s145_s30 = sand.u32 1, %s531_s11   ;;  %p35_p12 = scmp.eq.s32.totalorder %s32_s29, 0 }
  0x12   : > { %p376_p13 = scmp.lt.s32.totalorder %s543_s14, 2  ;;  %s349_s3 = sshll.u32 %s145_s30, 5 }
  0x13   : > { %s359_s4 = sshll.u32 %s539_s13, 5  ;;  %s149_s15 = scalar_lea.vmem [#allocation2], %s349_s3 }
  0x14   : > { %s633_s5 = scalar_select %p35_p12, %s531_s11, %s37_s27  }
  0x15   : > { %s156_s8 = scalar_lea.hbm %s674_s0, %s359_s4  ;;  %s159_s18 = sshll.u32 %s149_s15, 4  ;;  %s160_s18 = int_to_ptr.vmem [resolvable:$true] %s159_s18 }
  0x16   : > { %s157_s9 = sshll.u32 %s156_s8, 4  ;;  %p372_p0 = pnand %p376_p13, %p623_p11  ;;  %s158_s9 = int_to_ptr.hbm [resolvable:$true] %s157_s9 }
  0x17   : > { %s146_s19 = scalar_lea.sflag [#allocation3], %s145_s30  ;;  %171 = sbr.rel (%p608_p5) target bundleno = 40 (0x28), region = 28 }
  0x18   : > { %374 = dma.hbm_to_vmem [thread:$0]  (!%p372_p0), %s158_s9, 512, %s160_s18, %s146_s19, %s546_s24, %s546_s24, %s547_s25  }
  0x19   : > { %s173_s20 = sand.u32 (!%p608_p5), 1, %s527_s10  }
  0x1a   : > { %s353_s22 = sshll.u32 (!%p608_p5), %s173_s20, 5  ;;  %s174_s23 = scalar_lea.sflag (!%p608_p5), [#allocation3], %s173_s20 }
  0x1b   : > { %s177_s27 = scalar_lea.vmem (!%p608_p5), [#allocation2], %s353_s22 }
  0x1c   : > { %514 = dma.done.wait (%p601_p4), %s174_s23, 512  }
  0x1d   : > { %516 = vsyncadd (%p601_p4), %s174_s23, 4294966784 }
  0x1e   : > { %518 = dma.done.wait (%p593_p1), [#allocation5], 512  }
  0x1f   : > { %520 = vsyncadd (%p593_p1), [#allocation5], 4294966784  ;;  %p211_p2 = scmp.lt.s32.totalorder %s535_s12, 1  ;;  %v220_v0 = vld [vmem:[%s177_s27] sm:$0xff]  ;;  %vm232_vm0 = vcmask 261120   ;;  %v221_v2 = vld [vmem:[%s177_s27 + $0x8] sm:$0xff] }
  0x20   : > { %v224_v1 = vld [vmem:[#allocation4] sm:$0xff]  ;;  %v225_v4 = vld [vmem:[#allocation4 + $0x8] sm:$0xff]  ;;  %v222_v5 = vld [vmem:[%s177_s27 + $0x10] sm:$0xff] }
  0x21   : > { %s689_s12 = smov (!%p211_p2, %s535_s12), 1  ;;  %v228_v3 = vadd.f32 %v224_v1, %v220_v0  ;;  %v226_v6 = vld [vmem:[#allocation4 + $0x10] sm:$0xff]  ;;  %v229_v7 = vadd.f32 %v225_v4, %v221_v2  ;;  %v223_v9 = vld [vmem:[%s177_s27 + $0x18] sm:$0xff] }
  0x22   : > { %s360_s21 = sshll.u32 %s689_s12, 5  ;;  %v230_v8 = vadd.f32 %v226_v6, %v222_v5  ;;  %v227_v10 = vld [vmem:[#allocation4 + $0x18] sm:$0xff] }
  0x23   : > { %s218_s28 = scalar_lea.vmem %s676_s2, %s360_s21  ;;  %v231_v11 = vadd.f32 %v227_v10, %v223_v9 }
  0x24   : > { %233 = vst.msk [vmem:[%s218_s28] sm:$0xff] %vm232_vm0, %v228_v3 }
  0x25   : > { %234 = vst.msk [vmem:[%s218_s28 + $0x8] sm:$0xff] %vm232_vm0, %v229_v7 }
  0x26   : > { %235 = vst.msk [vmem:[%s218_s28 + $0x10] sm:$0xff] %vm232_vm0, %v230_v8 }
  0x27   : > { %236 = vst.msk [vmem:[%s218_s28 + $0x18] sm:$0xff] %vm232_vm0, %v231_v11 }
  0x28 PF: > { %s16_s14 = sadd.s32 1, %s543_s14   ;;  %s681_s9 = smov %s527_s10 }
  0x29   : > { %p13_p1 = scmp.ge.s32.totalorder %s16_s14, 4   ;;  %s682_s10 = smov %s531_s11 }
  0x2a   : > { %s683_s11 = smov %s633_s5  ;;  %s684_s12 = smov %s539_s13 }
  0x2b   : > { %s685_s13 = smov %s687_s26  ;;  %15 = sbr.rel (!%p13_p1) target bundleno = 5 (0x5), region = 73 }
  0x30   :  { %267 = vsyncpa [#allocation3], 1 }
  0x31   :  { %269 = vsyncpa [#allocation3 + $0x1], 1 }
  0x32   :  { %270 = vsyncpa [#allocation5], 1 }

// kernel: encoder_forward.9
= control target key start
LH: loop header
LB: loop body
LE: loop exit
PB: predicated region body
PF: predicated region fallthrough
CT: control target
= control target key end

     0   :  { %s1349_s18 = smov 0   ;;  %s1351_s19 = smov 0   ;;  %s1553_s0 = inlined_call_operand.vmem [shape: bf16[2,32,64], index: 0, kind: input, shape index: {}]   ;;  %s1554_s1 = inlined_call_operand.vmem [shape: bf16[2,32,64], index: 1, kind: input, shape index: {}]   ;;  %s1555_s2 = inlined_call_operand.vmem [shape: bf16[2,32,64], index: 2, kind: input, shape index: {}]   ;;  %s1556_s3 = inlined_call_operand.vmem [shape: bf16[64,64], index: 3, kind: input, shape index: {}]   ;;  %s1557_s4 = inlined_call_operand.vmem [shape: f32[1,64], index: 4, kind: input, shape index: {}]   ;;  %s1558_s5 = inlined_call_operand.vmem [shape: bf16[2,32,64], index: 5, kind: output, shape index: {}]  }
   0x1   :  { %s1353_s20 = smov 0  }
   0x2 LB: > { %s27_s21 = sadd.s32 1, %s1307_s19  ;;  %p1110_p0 = scmp.ge.s32.totalorder %s1311_s20, 1  ;;  %s1311_s20 = sphi %s1353_s20, %s15_s20   ;;  %s1307_s19 = sphi %s1351_s19, %s1560_s19   ;;  %s1303_s18 = sphi %s1349_s18, %s1559_s18  }
   0x3   : > { %p29_p1 = scmp.ge.s32.totalorder %s27_s21, 2  ;;  %p228_p2 = scmp.lt.s32.totalorder %s1311_s20, 3 }
   0x5   : > { %s1562_s21 = smov (%p29_p1, %s27_s21), 0  ;;  %p229_p3 = pnand %p1110_p0, %p228_p2 }
   0x6   : > { %p275_p4 = scmp.lt.s32.totalorder (!%p229_p3), %s1303_s18, 1  ;;  %s1313_s29 = smov (!%p229_p3), 112  }
   0x7   : > { %232 = sbr.rel (%p229_p3) target bundleno = 1112 (0x458), region = 40  ;;  %s1314_s30 = smov (!%p229_p3), 80  }
   0x8   : > { %s1315_s6 = smov (!%p229_p3), 96   ;;  %s1316_s10 = smov (!%p229_p3), 16  }
   0x9   : > { %s1317_s11 = smov (!%p229_p3), 48   ;;  %s1318_s12 = smov (!%p229_p3), 32  }
   0xc   : > { %s1564_s18 = smov (!%p275_p4, %s1303_s18), 1  ;;  %vm337_vm0 = vcmask 130048   ;;  %vm369_vm1 = vcmask 261120   ;;  %vm921_vm2 = vcmask 392192   ;;  %vm962_vm3 = vcmask 523264  }
   0xd   : > { %s1367_s22 = sshll.u32 %s1564_s18, 4  ;;  %vm990_vm4 = vcmask 519168  }
   0xe   : > { %s288_s25 = scalar_lea.vmem %s1554_s1, %s1367_s22  ;;  %s282_s28 = scalar_lea.vmem %s1553_s0, %s1367_s22 }
   0xf   : > { %v1176_v0 = vld [vmem:[%s288_s25 + $0x8] sm:$0xff]  ;;  %v1184_v1 = vld [vmem:[%s282_s28] sm:$0xff]   ;;  %s293_s9 = scalar_lea.vmem %s1555_s2, %s1367_s22 }
  0x10   : > { %v1185_v2 = vunpack.c.l.bf16 %v1184_v1  ;;  %v1186_v3 = vunpack.c.h.bf16 %v1184_v1  ;;  %v1191_v4 = vld [vmem:[%s282_s28 + $0x8] sm:$0xff]   ;;  %475 = vrot.lane.b32.xlu0 %v1176_v0, %s1313_s29  ;;  %v348_v5 = vsel %vm337_vm0, %v1176_v0, 0  ;;  %v1175_v10 = vld [vmem:[%s288_s25] sm:$0xff] }
  0x11   : > { %v1189_v6 = vunpack.c.l.bf16 %v1191_v4  ;;  %v1190_v7 = vunpack.c.h.bf16 %v1191_v4  ;;  %356 = vmatpush.bf16.xpose.msra.mxu0 %v348_v5  ;;  %v345_v15 = vsel %vm337_vm0, %v1175_v10, 0  ;;  %v1399_v26 = vld [vmem:[%s293_s9 + $0x8] sm:$0xff]  ;;  %v1407_v32 = vld [vmem:[%s293_s9] sm:$0xff] }
  0x12   : > { %v313_v8 = vmul.f32 0.25, %v1185_v2  ;;  %v314_v9 = vmul.f32 0.25, %v1186_v3  ;;  %442 = vmatpush.bf16.msra.mxu1 %v1399_v26  ;;  %1192 = vmatpush.bf16.msra.mxu3 %v1399_v26 }
  0x13   : > { %v315_v11 = vmul.f32 0.25, %v1189_v6  ;;  %v316_v12 = vmul.f32 0.25, %v1190_v7 }
  0x14   : > { %v317_v13 = vpack.c.bf16 %v314_v9, %v313_v8 }
  0x15   : > { %v318_v14 = vpack.c.bf16 %v316_v12, %v315_v11 }
  0x16   : > { %469 = vrot.lane.b32.xlu1 %v317_v13, %s1313_s29  ;;  %443 = vmatpush.bf16.msra.mxu1 %v1407_v32 }
  0x17   : > { %471 = vrot.lane.b32.xlu2 %v318_v14, %s1313_s29  ;;  %1193 = vmatpush.bf16.msra.mxu3 %v1407_v32 }
  0x18   : > { %473 = vrot.lane.b32.xlu0 %v1175_v10, %s1313_s29 }
  0x19   : > { %357 = vmatpush.bf16.xpose.msra.mxu0 %v345_v15 }
  0x1f   : > { %733 = vrot.lane.b32.xlu2 %v1175_v10, %s1314_s30 }
  0x20   : > { %1127 = vmatmul.msk.bf16.vlgmr.msra.gmra.mxu0 %vm337_vm0, %v317_v13  ;;  %605 = vrot.lane.b32.xlu0 %v1176_v0, %s1315_s6 }
  0x28   : > { %735 = vrot.lane.b32.xlu0 %v1176_v0, %s1314_s30 }
  0x30   : > { %1128 = vmatmul.msk.bf16.gmra.mxu0 %vm337_vm0, %v318_v14  ;;  %603 = vrot.lane.b32.xlu0 %v1175_v10, %s1315_s6 }
  0x38   : > { %599 = vrot.lane.b32.xlu0 %v317_v13, %s1315_s6 }
  0x40   : > { %601 = vrot.lane.b32.xlu0 %v318_v14, %s1315_s6 }
  0x71   : > { %v472_v22 = vpop.permute.xlu2 %471 }
  0x79   : > { %v734_v28 = vpop.permute.xlu2 %733 }
  0x7a   : > { %v744_v31 = vsel %vm337_vm0, %v734_v28, 0 }
  0x82   : > { %v476_v16 = vpop.permute.xlu0 %475 }
  0x83   : > { %v487_v17 = vsel %vm337_vm0, %v476_v16, 0 }
  0x84   : > { %495 = vmatpush.bf16.xpose.msra.mxu2 %v487_v17 }
  0x88   : > { %v470_v20 = vpop.permute.xlu1 %469 }
  0x8a   : > { %v474_v18 = vpop.permute.xlu0 %473 }
  0x8b   : > { %v484_v19 = vsel %vm337_vm0, %v474_v18, 0 }
  0x8c   : > { %496 = vmatpush.bf16.xpose.msra.mxu2 %v484_v19 }
  0x92   : > { %v606_v21 = vpop.permute.xlu0 %605 }
  0x93   : > { %1139 = vmatmul.msk.bf16.vlgmr.msra.gmra.mxu2 %vm337_vm0, %v470_v20  ;;  %v617_v33 = vsel %vm337_vm0, %v606_v21, 0 }
  0x94   : > { %625 = vmatpush.bf16.xpose.msrb.mxu1 %v617_v33 }
  0x9a   : > { %v736_v25 = vpop.permute.xlu0 %735 }
  0x9b   : > { %v747_v27 = vsel %vm337_vm0, %v736_v25, 0 }
  0x9c   : > { %755 = vmatpush.bf16.xpose.msrb.mxu0 %v747_v27 }
  0x9d   : > { %v359_v23 = vpop.f32.mrf.mxu0 }
  0x9e   : > { %v370_v24 = vsel %vm369_vm1, %v359_v23, -inf }
  0x9f   : > { %371 = vmax.xlane.f32.xlu1 %v370_v24 }
  0xa2   : > { %v604_v38 = vpop.permute.xlu0 %603 }
  0xa3   : > { %1140 = vmatmul.msk.bf16.gmra.mxu2 %vm337_vm0, %v472_v22  ;;  %v614_v39 = vsel %vm337_vm0, %v604_v38, 0 }
  0xa4   : > { %756 = vmatpush.bf16.xpose.msrb.mxu0 %v744_v31  ;;  %626 = vmatpush.bf16.xpose.msrb.mxu1 %v614_v39 }
  0xa5   : > { %v361_v29 = vpop.f32.mrf.mxu0 }
  0xa6   : > { %v373_v30 = vsel %vm369_vm1, %v361_v29, -inf }
  0xa7   : > { %374 = vmax.xlane.f32.xlu2 %v373_v30 }
  0xaa   : > { %v600_v63 = vpop.permute.xlu0 %599 }
  0xad   : > { %v364_v34 = vpop.f32.mrf.mxu0 }
  0xae   : > { %v376_v36 = vsel %vm369_vm1, %v364_v34, -inf }
  0xb2   : > { %v602_v0 = vpop.permute.xlu0 %601 }
  0xb5   : > { %v366_v35 = vpop.f32.mrf.mxu0 }
  0xb6   : > { %v379_v37 = vsel %vm369_vm1, %v366_v35, -inf }
  0xb7   : > { %380 = vmax.xlane.f32.xlu0 %v379_v37 }
  0xb8   : > { %558 = vrot.lane.b32.xlu1 %v1399_v26, %s1313_s29 }
  0xbf   : > { %729 = vrot.lane.b32.xlu2 %v317_v13, %s1314_s30 }
  0xc7   : > { %731 = vrot.lane.b32.xlu2 %v318_v14, %s1314_s30 }
  0xe2   : > { %377 = vmax.xlane.f32.xlu1 %v376_v36 }
 0x112   : > { %v372_v42 = vpop.xlane.xlu1 %371 }
 0x113   : > { %v382_v44 = vsub.f32 %v359_v23, %v372_v42 }
 0x116   : > { %v498_v40 = vpop.f32.mrf.mxu2 }
 0x117   : > { %v508_v41 = vsel %vm369_vm1, %v498_v40, -inf }
 0x118   : > { %509 = vmax.xlane.f32.xlu2 %v508_v41 }
 0x11a   : > { %v375_v43 = vpop.xlane.xlu2 %374 }
 0x11b   : > { %v383_v45 = vsub.f32 %v361_v29, %v375_v43 }
 0x11d   : > { %v386_v46 = vpack.c.bf16 %v383_v45, %v382_v44 }
 0x11e   : > { %v500_v47 = vpop.f32.mrf.mxu2 }
 0x11f   : > { %v388_v48 = vunpack.c.l.bf16 %v386_v46  ;;  %v389_v49 = vunpack.c.h.bf16 %v386_v46  ;;  %v511_v50 = vsel %vm369_vm1, %v500_v47, -inf }
 0x120   : > { %512 = vmax.xlane.f32.xlu1 %v511_v50 }
 0x121   : > { %v392_v51 = vmul.f32 1.442695, %v388_v48  ;;  %v394_v52 = vmul.f32 1.442695, %v389_v49 }
 0x122   : > { %v730_v53 = vpop.permute.xlu2 %729 }
 0x123   : > { %1225 = vpow2.f32 %v392_v51  ;;  %1147 = vmatmul.msk.bf16.vlgmr.msrb.gmra.mxu0 %vm337_vm0, %v730_v53 }
 0x124   : > { %1227 = vpow2.f32 %v394_v52 }
 0x126   : > { %v503_v54 = vpop.f32.mrf.mxu2 }
 0x127   : > { %v514_v55 = vsel %vm369_vm1, %v503_v54, -inf }
 0x128   : > { %515 = vmax.xlane.f32.xlu2 %v514_v55 }
 0x129   : > { %v1226_v56 = vpop.eup %1225 }
 0x12a   : > { %v1228_v57 = vpop.eup %1227  ;;  %v559_v59 = vpop.permute.xlu1 %558 }
 0x12b   : > { %v1423_v58 = vpack.c.bf16 %v1228_v57, %v1226_v56  ;;  %574 = vmatpush.bf16.msrb.mxu3 %v559_v59  ;;  %v732_v62 = vpop.permute.xlu2 %731  ;;  %v381_v3 = vpop.xlane.xlu0 %380 }
 0x12c   : > { %v385_v4 = vsub.f32 %v366_v35, %v381_v3 }
 0x12d   : > { %1137 = vmatmul.msk.bf16.vlgmr.msra.gmra.mxu1 %vm369_vm1, %v1423_v58 }
 0x12e   : > { %v505_v60 = vpop.f32.mrf.mxu2 }
 0x12f   : > { %v517_v61 = vsel %vm369_vm1, %v505_v60, -inf }
 0x130   : > { %518 = vmax.xlane.f32.xlu0 %v517_v61 }
 0x133   : > { %1148 = vmatmul.msk.bf16.gmra.mxu0 %vm337_vm0, %v732_v62 }
 0x139   : > { %556 = vrot.lane.b32.xlu1 %v1407_v32, %s1313_s29  ;;  %s302_s29 = scalar_lea.vmem %s1558_s5, %s1367_s22 }
 0x13d   : > { %1143 = vmatmul.msk.bf16.vlgmr.msrb.gmra.mxu1 %vm337_vm0, %v600_v63 }
 0x14d   : > { %1144 = vmatmul.msk.bf16.gmra.mxu1 %vm337_vm0, %v602_v0 }
 0x155   : > { %v378_v1 = vpop.xlane.xlu1 %377 }
 0x156   : > { %v384_v2 = vsub.f32 %v364_v34, %v378_v1 }
 0x158   : > { %v387_v5 = vpack.c.bf16 %v385_v4, %v384_v2 }
 0x15a   : > { %v390_v6 = vunpack.c.l.bf16 %v387_v5  ;;  %v391_v7 = vunpack.c.h.bf16 %v387_v5 }
 0x15c   : > { %v396_v8 = vmul.f32 1.442695, %v390_v6  ;;  %v398_v9 = vmul.f32 1.442695, %v391_v7 }
 0x15e   : > { %1229 = vpow2.f32 %v396_v8 }
 0x15f   : > { %1231 = vpow2.f32 %v398_v9 }
 0x164   : > { %v1230_v10 = vpop.eup %1229 }
 0x165   : > { %v1232_v11 = vpop.eup %1231 }
 0x166   : > { %v1433_v12 = vpack.c.bf16 %v1232_v11, %v1230_v10 }
 0x168   : > { %1138 = vmatmul.msk.bf16.vlgmr.msra.gmra.mxu3 %vm369_vm1, %v1433_v12 }
 0x18b   : > { %v510_v13 = vpop.xlane.xlu2 %509 }
 0x18c   : > { %v520_v16 = vsub.f32 %v498_v40, %v510_v13 }
 0x193   : > { %v513_v14 = vpop.xlane.xlu1 %512 }
 0x194   : > { %v521_v15 = vsub.f32 %v500_v47, %v513_v14 }
 0x196   : > { %v524_v17 = vpack.c.bf16 %v521_v15, %v520_v16 }
 0x198   : > { %v526_v18 = vunpack.c.l.bf16 %v524_v17  ;;  %v527_v19 = vunpack.c.h.bf16 %v524_v17 }
 0x19a   : > { %v530_v20 = vmul.f32 1.442695, %v526_v18  ;;  %v532_v21 = vmul.f32 1.442695, %v527_v19 }
 0x19b   : > { %v516_v24 = vpop.xlane.xlu2 %515 }
 0x19c   : > { %1233 = vpow2.f32 %v530_v20  ;;  %v522_v28 = vsub.f32 %v503_v54, %v516_v24 }
 0x19d   : > { %1235 = vpow2.f32 %v532_v21  ;;  %v402_v21 = vunpack.c.l.bf16 %v1423_v58 }
 0x1a0   : > { %v758_v22 = vpop.f32.mrf.mxu0 }
 0x1a1   : > { %v768_v23 = vsel %vm369_vm1, %v758_v22, -inf }
 0x1a2   : > { %769 = vmax.xlane.f32.xlu0 %v768_v23  ;;  %v1234_v31 = vpop.eup %1233  ;;  %v405_v23 = vunpack.c.h.bf16 %v1433_v12 }
 0x1a3   : > { %v519_v25 = vpop.xlane.xlu0 %518  ;;  %v1236_v34 = vpop.eup %1235 }
 0x1a4   : > { %v523_v27 = vsub.f32 %v505_v60, %v519_v25  ;;  %v538_v39 = vpack.c.bf16 %v1236_v34, %v1234_v31  ;;  %v415_v24 = vsel %vm369_vm1, %v405_v23, 0.0 }
 0x1a6   : > { %v525_v29 = vpack.c.bf16 %v523_v27, %v522_v28  ;;  %v540_v53 = vunpack.c.l.bf16 %v538_v39  ;;  %v541_v55 = vunpack.c.h.bf16 %v538_v39 }
 0x1a8   : > { %v760_v30 = vpop.f32.mrf.mxu0  ;;  %v528_v36 = vunpack.c.l.bf16 %v525_v29  ;;  %v529_v38 = vunpack.c.h.bf16 %v525_v29  ;;  %v544_v54 = vsel %vm369_vm1, %v540_v53, 0.0 }
 0x1a9   : > { %v771_v33 = vsel %vm369_vm1, %v760_v30, -inf }
 0x1aa   : > { %v1439_v35 = vpop.f32.mrf.mxu1  ;;  %772 = vmax.xlane.f32.xlu2 %v771_v33  ;;  %v534_v40 = vmul.f32 1.442695, %v528_v36  ;;  %v536_v41 = vmul.f32 1.442695, %v529_v38 }
 0x1ab   : > { %v557_v37 = vpop.permute.xlu1 %556 }
 0x1ac   : > { %575 = vmatpush.bf16.msrb.mxu3 %v557_v37  ;;  %1237 = vpow2.f32 %v534_v40 }
 0x1ad   : > { %1239 = vpow2.f32 %v536_v41 }
 0x1af   : > { %1141 = vmatmul.msk.bf16.vlgmr.msrb.gmra.mxu3 %vm369_vm1, %v538_v39 }
 0x1b0   : > { %v1461_v51 = vpop.f32.mrf.mxu0 }
 0x1b1   : > { %v774_v52 = vsel %vm369_vm1, %v1461_v51, -inf }
 0x1b2   : > { %v1442_v42 = vpop.f32.mrf.mxu1  ;;  %v1238_v43 = vpop.eup %1237 }
 0x1b3   : > { %v1240_v44 = vpop.eup %1239 }
 0x1b4   : > { %v539_v47 = vpack.c.bf16 %v1240_v44, %v1238_v43 }
 0x1b6   : > { %688 = vrot.lane.b32.xlu0 %v1399_v26, %s1315_s6  ;;  %v543_v11 = vunpack.c.h.bf16 %v539_v47  ;;  %v542_v19 = vunpack.c.l.bf16 %v539_v47 }
 0x1b8   : > { %v1472_v6 = vpop.f32.mrf.mxu0  ;;  %v553_v17 = vsel %vm369_vm1, %v543_v11, 0.0  ;;  %v550_v20 = vsel %vm369_vm1, %v542_v19, 0.0  ;;  %v403_v11 = vunpack.c.h.bf16 %v1423_v58 }
 0x1b9   : > { %v777_v7 = vsel %vm369_vm1, %v1472_v6, -inf }
 0x1ba   : > { %v1446_v45 = vpop.f32.mrf.mxu1 }
 0x1bb   : > { %v638_v46 = vsel %vm369_vm1, %v1446_v45, -inf }
 0x1bc   : > { %639 = vmax.xlane.f32.xlu1 %v638_v46 }
 0x1be   : > { %686 = vrot.lane.b32.xlu0 %v1407_v32, %s1315_s6 }
 0x1bf   : > { %1142 = vmatmul.msk.bf16.gmra.mxu3 %vm369_vm1, %v539_v47 }
 0x1c2   : > { %v1453_v48 = vpop.f32.mrf.mxu1  ;;  %818 = vrot.lane.b32.xlu2 %v1399_v26, %s1314_s30  ;;  %v547_v26 = vsel %vm369_vm1, %v541_v55, 0.0 }
 0x1c3   : > { %v641_v59 = vsel %vm369_vm1, %v1453_v48, -inf }
 0x1ca   : > { %v1457_v49 = vpop.f32.mrf.mxu1 }
 0x1cb   : > { %v644_v50 = vsel %vm369_vm1, %v1457_v49, -inf }
 0x1cc   : > { %645 = vmax.xlane.f32.xlu1 %v644_v50 }
 0x1d2   : > { %v635_v56 = vpop.f32.mrf.mxu1 }
 0x1d3   : > { %v647_v57 = vsel %vm369_vm1, %v635_v56, -inf }
 0x1d4   : > { %775 = vmax.xlane.f32.xlu1 %v774_v52 }
 0x1dc   : > { %545 = vadd.xlane.f32.xlu1 %v544_v54 }
 0x1e4   : > { %548 = vadd.xlane.f32.xlu1 %v547_v26 }
 0x1e8   : > { %648 = vmax.xlane.f32.xlu0 %v647_v57 }
 0x1eb   : > { %642 = vmax.xlane.f32.xlu2 %v641_v59  ;;  %v1495_v59 = vpop.f32.mrf.mxu3 }
 0x203   : > { %816 = vrot.lane.b32.xlu2 %v1407_v32, %s1314_s30 }
 0x215   : > { %v770_v60 = vpop.xlane.xlu0 %769 }
 0x216   : > { %v780_v62 = vsub.f32 %v758_v22, %v770_v60  ;;  %v406_v22 = vsel %vm369_vm1, %v402_v21, 0.0 }
 0x21d   : > { %v773_v61 = vpop.xlane.xlu2 %772 }
 0x21e   : > { %v781_v63 = vsub.f32 %v760_v30, %v773_v61 }
 0x220   : > { %v784_v0 = vpack.c.bf16 %v781_v63, %v780_v62 }
 0x222   : > { %v786_v1 = vunpack.c.l.bf16 %v784_v0  ;;  %v787_v2 = vunpack.c.h.bf16 %v784_v0 }
 0x224   : > { %v790_v3 = vmul.f32 1.442695, %v786_v1  ;;  %v792_v4 = vmul.f32 1.442695, %v787_v2 }
 0x225   : > { %v819_v5 = vpop.permute.xlu2 %818 }
 0x226   : > { %1241 = vpow2.f32 %v790_v3  ;;  %834 = vmatpush.bf16.msrb.mxu2 %v819_v5  ;;  %v1499_v3 = vpop.f32.mrf.mxu3 }
 0x227   : > { %1243 = vpow2.f32 %v792_v4 }
 0x228   : > { %v689_v8 = vpop.permute.xlu0 %688 }
 0x229   : > { %704 = vmatpush.bf16.msra.mxu3 %v689_v8 }
 0x22c   : > { %v1242_v32 = vpop.eup %1241  ;;  %778 = vmax.xlane.f32.xlu2 %v777_v7 }
 0x22d   : > { %v1244_v9 = vpop.eup %1243 }
 0x22e   : > { %v798_v10 = vpack.c.bf16 %v1244_v9, %v1242_v32 }
 0x22f   : > { %v640_v25 = vpop.xlane.xlu1 %639 }
 0x230   : > { %v801_v13 = vunpack.c.h.bf16 %v798_v10  ;;  %v800_v14 = vunpack.c.l.bf16 %v798_v10  ;;  %v687_v18 = vpop.permute.xlu0 %686  ;;  %v650_v34 = vsub.f32 %v1446_v45, %v640_v25 }
 0x231   : > { %705 = vmatpush.bf16.msra.mxu3 %v687_v18 }
 0x232   : > { %v807_v15 = vsel %vm369_vm1, %v801_v13, 0.0  ;;  %v804_v16 = vsel %vm369_vm1, %v800_v14, 0.0  ;;  %v577_v32 = vpop.f32.mrf.mxu3 }
 0x233   : > { %808 = vadd.xlane.f32.xlu1 %v807_v15  ;;  %805 = vadd.xlane.f32.xlu0 %v804_v16 }
 0x234   : > { %554 = vadd.xlane.f32.xlu2 %v553_v17  ;;  %v409_v17 = vsel %vm369_vm1, %v403_v11, 0.0 }
 0x23a   : > { %v579_v16 = vpop.f32.mrf.mxu3 }
 0x23b   : > { %551 = vadd.xlane.f32.xlu0 %v550_v20 }
 0x23f   : > { %v646_v27 = vpop.xlane.xlu1 %645 }
 0x240   : > { %v652_v29 = vsub.f32 %v1457_v49, %v646_v27  ;;  %v404_v27 = vunpack.c.l.bf16 %v1433_v12 }
 0x243   : > { %407 = vadd.xlane.f32.xlu0 %v406_v22 }
 0x247   : > { %v776_v26 = vpop.xlane.xlu1 %775 }
 0x248   : > { %v782_v60 = vsub.f32 %v1461_v51, %v776_v26 }
 0x24b   : > { %416 = vadd.xlane.f32.xlu0 %v415_v24  ;;  %v582_v24 = vpop.f32.mrf.mxu3 }
 0x24f   : > { %v546_v8 = vpop.xlane.xlu1 %545 }
 0x257   : > { %v549_v15 = vpop.xlane.xlu1 %548 }
 0x25b   : > { %v649_v28 = vpop.xlane.xlu0 %648 }
 0x25c   : > { %v653_v30 = vsub.f32 %v635_v56, %v649_v28 }
 0x25e   : > { %v655_v31 = vpack.c.bf16 %v653_v30, %v652_v29  ;;  %v643_v33 = vpop.xlane.xlu2 %642 }
 0x25f   : > { %v651_v36 = vsub.f32 %v1453_v48, %v643_v33 }
 0x260   : > { %v658_v37 = vunpack.c.l.bf16 %v655_v31  ;;  %v659_v38 = vunpack.c.h.bf16 %v655_v31  ;;  %v412_v31 = vsel %vm369_vm1, %v404_v27, 0.0 }
 0x261   : > { %v654_v39 = vpack.c.bf16 %v651_v36, %v650_v34 }
 0x262   : > { %v664_v40 = vmul.f32 1.442695, %v658_v37  ;;  %v666_v41 = vmul.f32 1.442695, %v659_v38  ;;  %v584_v38 = vpop.f32.mrf.mxu3 }
 0x263   : > { %v656_v43 = vunpack.c.l.bf16 %v654_v39  ;;  %v657_v44 = vunpack.c.h.bf16 %v654_v39 }
 0x264   : > { %1245 = vpow2.f32 %v664_v40 }
 0x265   : > { %1247 = vpow2.f32 %v666_v41  ;;  %v660_v46 = vmul.f32 1.442695, %v656_v43  ;;  %v662_v47 = vmul.f32 1.442695, %v657_v44 }
 0x266   : > { %v817_v50 = vpop.permute.xlu2 %816 }
 0x267   : > { %1249 = vpow2.f32 %v660_v46  ;;  %835 = vmatpush.bf16.msrb.mxu2 %v817_v50 }
 0x268   : > { %1251 = vpow2.f32 %v662_v47 }
 0x26a   : > { %v1246_v49 = vpop.eup %1245  ;;  %1149 = vmatmul.msk.bf16.vlgmr.msrb.gmra.mxu2 %vm369_vm1, %v798_v10 }
 0x26b   : > { %v1248_v45 = vpop.eup %1247 }
 0x26c   : > { %v1488_v48 = vpack.c.bf16 %v1248_v45, %v1246_v49 }
 0x26d   : > { %v1250_v52 = vpop.eup %1249 }
 0x26e   : > { %v1252_v53 = vpop.eup %1251  ;;  %v673_v54 = vunpack.c.h.bf16 %v1488_v48  ;;  %v672_v39 = vunpack.c.l.bf16 %v1488_v48 }
 0x26f   : > { %v668_v55 = vpack.c.bf16 %v1252_v53, %v1250_v52 }
 0x270   : > { %v683_v56 = vsel %vm369_vm1, %v673_v54, 0.0  ;;  %v680_v46 = vsel %vm369_vm1, %v672_v39, 0.0 }
 0x271   : > { %1145 = vmatmul.msk.bf16.vlgmr.msra.gmra.mxu3 %vm369_vm1, %v668_v55  ;;  %684 = vadd.xlane.f32.xlu0 %v683_v56  ;;  %v670_v13 = vunpack.c.l.bf16 %v668_v55  ;;  %v671_v19 = vunpack.c.h.bf16 %v668_v55 }
 0x273   : > { %v674_v18 = vsel %vm369_vm1, %v670_v13, 0.0  ;;  %v677_v22 = vsel %vm369_vm1, %v671_v19, 0.0 }
 0x281   : > { %1146 = vmatmul.msk.bf16.gmra.mxu3 %vm369_vm1, %v1488_v48 }
 0x29f   : > { %v779_v57 = vpop.xlane.xlu2 %778 }
 0x2a0   : > { %v783_v61 = vsub.f32 %v1472_v6, %v779_v57 }
 0x2a2   : > { %v785_v62 = vpack.c.bf16 %v783_v61, %v782_v60 }
 0x2a4   : > { %v788_v63 = vunpack.c.l.bf16 %v785_v62  ;;  %v789_v0 = vunpack.c.h.bf16 %v785_v62 }
 0x2a6   : > { %v794_v1 = vmul.f32 1.442695, %v788_v63  ;;  %v796_v2 = vmul.f32 1.442695, %v789_v0  ;;  %v806_v14 = vpop.xlane.xlu0 %805  ;;  %v809_v45 = vpop.xlane.xlu1 %808 }
 0x2a7   : > { %v555_v23 = vpop.xlane.xlu2 %554 }
 0x2a8   : > { %1253 = vpow2.f32 %v794_v1 }
 0x2a9   : > { %1255 = vpow2.f32 %v796_v2 }
 0x2aa   : > { %1257 = vrcp.f32 %v549_v15 }
 0x2ab   : > { %1259 = vrcp.f32 %v546_v8 }
 0x2ae   : > { %v1254_v4 = vpop.eup %1253  ;;  %v552_v20 = vpop.xlane.xlu0 %551 }
 0x2af   : > { %v1256_v5 = vpop.eup %1255  ;;  %1261 = vrcp.f32 %v552_v20 }
 0x2b0   : > { %v799_v7 = vpack.c.bf16 %v1256_v5, %v1254_v4  ;;  %v1258_v21 = vpop.eup %1257  ;;  %1263 = vrcp.f32 %v555_v23 }
 0x2b1   : > { %v1260_v58 = vpop.eup %1259  ;;  %v592_v25 = vmul.f32 %v1258_v21, %v579_v16  ;;  %1265 = vrcp.f32 %v806_v14 }
 0x2b2   : > { %1150 = vmatmul.msk.bf16.gmra.mxu2 %vm369_vm1, %v799_v7  ;;  %v802_v9 = vunpack.c.l.bf16 %v799_v7  ;;  %v803_v51 = vunpack.c.h.bf16 %v799_v7  ;;  %v591_v28 = vmul.f32 %v1260_v58, %v577_v32  ;;  %1267 = vrcp.f32 %v809_v45 }
 0x2b3   : > { %v596_v29 = vpack.c.bf16 %v592_v25, %v592_v25 }
 0x2b4   : > { %v810_v6 = vsel %vm369_vm1, %v802_v9, 0.0  ;;  %v813_v10 = vsel %vm369_vm1, %v803_v51, 0.0  ;;  %v595_v33 = vpack.c.bf16 %v591_v28, %v591_v28 }
 0x2b5   : > { %811 = vadd.xlane.f32.xlu2 %v810_v6  ;;  %814 = vadd.xlane.f32.xlu1 %v813_v10  ;;  %v1262_v30 = vpop.eup %1261  ;;  %v874_v36 = vunpack.c.l.b16 %v596_v29 }
 0x2b6   : > { %v1264_v34 = vpop.eup %1263  ;;  %v593_v37 = vmul.f32 %v1262_v30, %v582_v24  ;;  %v873_v40 = vunpack.c.l.b16 %v595_v33  ;;  %v1513_v1 = vpop.xlane.xlu0 %407 }
 0x2b7   : > { %v594_v41 = vmul.f32 %v1264_v34, %v584_v38  ;;  %v1266_v53 = vpop.eup %1265 }
 0x2b8   : > { %v877_v43 = vpack.c.b16 %v874_v36, %v873_v40  ;;  %v597_v44 = vpack.c.bf16 %v593_v37, %v593_v37  ;;  %v1268_v54 = vpop.eup %1267 }
 0x2b9   : > { %v598_v12 = vpack.c.bf16 %v594_v41, %v594_v41 }
 0x2ba   : > { %v875_v47 = vunpack.c.l.b16 %v597_v44 }
 0x2bb   : > { %v876_v50 = vunpack.c.l.b16 %v598_v12 }
 0x2bd   : > { %410 = vadd.xlane.f32.xlu2 %v409_v17  ;;  %675 = vadd.xlane.f32.xlu1 %v674_v18  ;;  %v878_v49 = vpack.c.b16 %v876_v50, %v875_v47 }
 0x2be   : > { %v417_v7 = vpop.xlane.xlu0 %416 }
 0x2c5   : > { %678 = vadd.xlane.f32.xlu1 %v677_v22 }
 0x2cd   : > { %413 = vadd.xlane.f32.xlu1 %v412_v31 }
 0x2d5   : > { %879 = vrot.lane.b32.xlu2 %v877_v43, %s1316_s10  ;;  %681 = vadd.xlane.f32.xlu1 %v680_v46 }
 0x2dd   : > { %881 = vrot.lane.b32.xlu2 %v878_v49, %s1316_s10  ;;  %v1181_v49 = vld [vmem:[%s1556_s3 + $0x10] sm:$0xff] }
 0x2e4   : > { %v685_v18 = vpop.xlane.xlu0 %684 }
 0x2ed   : > { %v837_v52 = vpop.f32.mrf.mxu2 }
 0x2ee   : > { %v851_v48 = vmul.f32 %v1266_v53, %v837_v52 }
 0x2f0   : > { %v855_v56 = vpack.c.bf16 %v851_v48, %v851_v48  ;;  %v1180_v48 = vld [vmem:[%s1556_s3 + $0x8] sm:$0xff] }
 0x2f2   : > { %v901_v60 = vunpack.c.l.b16 %v855_v56 }
 0x2f4   : > { %v707_v0 = vpop.f32.mrf.mxu3 }
 0x2f5   : > { %v839_v55 = vpop.f32.mrf.mxu2 }
 0x2f6   : > { %v852_v26 = vmul.f32 %v1268_v54, %v839_v55  ;;  %v1179_v54 = vld [vmem:[%s1556_s3] sm:$0xff] }
 0x2f8   : > { %v856_v57 = vpack.c.bf16 %v852_v26, %v852_v26 }
 0x2fa   : > { %v902_v61 = vunpack.c.l.b16 %v856_v57 }
 0x2fc   : > { %v905_v62 = vpack.c.b16 %v902_v61, %v901_v60  ;;  %v709_v4 = vpop.f32.mrf.mxu3 }
 0x2fe   : > { %907 = vrot.lane.b32.xlu0 %v905_v62, %s1317_s11 }
 0x304   : > { %v712_v10 = vpop.f32.mrf.mxu3 }
 0x30c   : > { %v714_v34 = vpop.f32.mrf.mxu3 }
 0x328   : > { %v815_v63 = vpop.xlane.xlu1 %814  ;;  %v812_v9 = vpop.xlane.xlu2 %811 }
 0x330   : > { %v676_v2 = vpop.xlane.xlu1 %675  ;;  %v411_v55 = vpop.xlane.xlu2 %410 }
 0x331   : > { %1269 = vrcp.f32 %v676_v2 }
 0x335   : > { %v842_v5 = vpop.f32.mrf.mxu2 }
 0x337   : > { %v1270_v32 = vpop.eup %1269 }
 0x338   : > { %v679_v8 = vpop.xlane.xlu1 %678  ;;  %v721_v51 = vmul.f32 %v1270_v32, %v707_v0 }
 0x339   : > { %1271 = vrcp.f32 %v679_v8 }
 0x33a   : > { %1273 = vrcp.f32 %v417_v7  ;;  %v725_v16 = vpack.c.bf16 %v721_v51, %v721_v51 }
 0x33b   : > { %1275 = vrcp.f32 %v815_v63 }
 0x33c   : > { %1277 = vrcp.f32 %v812_v9  ;;  %v887_v58 = vunpack.c.l.b16 %v725_v16 }
 0x33d   : > { %v844_v11 = vpop.f32.mrf.mxu2 }
 0x33f   : > { %v1272_v6 = vpop.eup %1271 }
 0x340   : > { %v1274_v13 = vpop.eup %1273  ;;  %v414_v14 = vpop.xlane.xlu1 %413  ;;  %v722_v15 = vmul.f32 %v1272_v6, %v709_v4 }
 0x341   : > { %v1276_v17 = vpop.eup %1275  ;;  %1279 = vrcp.f32 %v414_v14  ;;  %v462_v22 = vmul.f32 %v1274_v13, %v1499_v3  ;;  %v880_v4 = vpop.permute.xlu2 %879 }
 0x342   : > { %v854_v19 = vmul.f32 %v1276_v17, %v844_v11  ;;  %v726_v20 = vpack.c.bf16 %v722_v15, %v722_v15  ;;  %v1278_v21 = vpop.eup %1277  ;;  %1281 = vrcp.f32 %v685_v18  ;;  %v1224_v11 = vld [vmem:[%s1557_s4] ss:$0 sm:$0xff] }
 0x343   : > { %v853_v23 = vmul.f32 %v1278_v21, %v842_v5  ;;  %v466_v29 = vpack.c.bf16 %v462_v22, %v462_v22 }
 0x344   : > { %v888_v24 = vunpack.c.l.b16 %v726_v20  ;;  %v858_v25 = vpack.c.bf16 %v854_v19, %v854_v19 }
 0x345   : > { %v857_v30 = vpack.c.bf16 %v853_v23, %v853_v23  ;;  %v866_v41 = vunpack.c.l.b16 %v466_v29 }
 0x346   : > { %v891_v27 = vpack.c.b16 %v888_v24, %v887_v58  ;;  %v904_v36 = vunpack.c.l.b16 %v858_v25 }
 0x347   : > { %v1280_v28 = vpop.eup %1279  ;;  %v903_v39 = vunpack.c.l.b16 %v857_v30 }
 0x348   : > { %v461_v31 = vmul.f32 %v1280_v28, %v1495_v59  ;;  %893 = vrot.lane.b32.xlu1 %v891_v27, %s1318_s12  ;;  %v682_v33 = vpop.xlane.xlu1 %681  ;;  %v1282_v38 = vpop.eup %1281  ;;  %v1182_v59 = vld [vmem:[%s1556_s3 + $0x18] sm:$0xff] }
 0x349   : > { %1283 = vrcp.f32 %v682_v33  ;;  %v724_v3 = vmul.f32 %v1282_v38, %v714_v34  ;;  %v906_v43 = vpack.c.b16 %v904_v36, %v903_v39  ;;  %971 = vmatpush.bf16.msra.mxu1 %v1182_v59 }
 0x34a   : > { %v465_v37 = vpack.c.bf16 %v461_v31, %v461_v31  ;;  %1285 = vrcp.f32 %v411_v55 }
 0x34b   : > { %v728_v12 = vpack.c.bf16 %v724_v3, %v724_v3  ;;  %1287 = vrcp.f32 %v1513_v1 }
 0x34c   : > { %v865_v40 = vunpack.c.l.b16 %v465_v37 }
 0x34d   : > { %v890_v45 = vunpack.c.l.b16 %v728_v12  ;;  %972 = vmatpush.bf16.msra.mxu1 %v1181_v49 }
 0x34e   : > { %v868_v44 = vpack.c.b16 %v866_v41, %v865_v40 }
 0x34f   : > { %v1284_v46 = vpop.eup %1283 }
 0x350   : > { %909 = vrot.lane.b32.xlu1 %v906_v43, %s1317_s11  ;;  %v723_v47 = vmul.f32 %v1284_v46, %v712_v10  ;;  %v1286_v56 = vpop.eup %1285 }
 0x351   : > { %973 = vmatpush.bf16.msra.mxu1 %v1180_v48  ;;  %v1288_v26 = vpop.eup %1287  ;;  %v460_v57 = vmul.f32 %v1286_v56, %v1442_v42  ;;  %v882_v42 = vpop.permute.xlu2 %881 }
 0x352   : > { %v727_v50 = vpack.c.bf16 %v723_v47, %v723_v47  ;;  %v459_v60 = vmul.f32 %v1288_v26, %v1439_v35  ;;  %v916_v35 = vsel %vm337_vm0, %v868_v44, %v882_v42 }
 0x353   : > { %v464_v61 = vpack.c.bf16 %v460_v57, %v460_v57 }
 0x354   : > { %v889_v52 = vunpack.c.l.b16 %v727_v50  ;;  %v463_v62 = vpack.c.bf16 %v459_v60, %v459_v60 }
 0x355   : > { %974 = vmatpush.bf16.msra.mxu1 %v1179_v54  ;;  %v864_v63 = vunpack.c.l.b16 %v464_v61 }
 0x356   : > { %v892_v53 = vpack.c.b16 %v890_v45, %v889_v52  ;;  %v863_v0 = vunpack.c.l.b16 %v463_v62 }
 0x358   : > { %895 = vrot.lane.b32.xlu0 %v892_v53, %s1318_s12  ;;  %v867_v2 = vpack.c.b16 %v864_v63, %v863_v0 }
 0x35a   : > { %v913_v5 = vsel %vm337_vm0, %v867_v2, %v880_v4 }
 0x370   : > { %v908_v8 = vpop.permute.xlu0 %907 }
 0x3ba   : > { %v894_v7 = vpop.permute.xlu1 %893 }
 0x3bb   : > { %v918_v1 = vsel %vm369_vm1, %v913_v5, %v894_v7 }
 0x3bc   : > { %v923_v32 = vsel %vm921_vm2, %v918_v1, %v908_v8 }
 0x3bd   : > { %1167 = vmatmul.msk.bf16.vlgmr.msra.gmra.mxu1 %vm962_vm3, %v923_v32 }
 0x3c2   : > { %v910_v51 = vpop.permute.xlu1 %909 }
 0x3ca   : > { %v896_v9 = vpop.permute.xlu0 %895 }
 0x3cb   : > { %v920_v6 = vsel %vm369_vm1, %v916_v35, %v896_v9 }
 0x3cc   : > { %v925_v10 = vsel %vm921_vm2, %v920_v6, %v910_v51 }
 0x3cd   : > { %1168 = vmatmul.msk.bf16.gmra.mxu1 %vm962_vm3, %v925_v10 }
 0x43a   : > { %v976_v13 = vpop.f32.mrf.mxu1 }
 0x43b   : > { %v977_v14 = vadd.f32 %v1224_v11, %v976_v13 }
 0x43d   : > { %v986_v15 = vpack.c.bf16 %v977_v14, %v977_v14 }
 0x43f   : > { %991 = vst.msk [vmem:[%s302_s29] sm:$0xf] %vm990_vm4, %v986_v15 }
 0x442   : > { %v978_v16 = vpop.f32.mrf.mxu1 }
 0x443   : > { %v979_v17 = vadd.f32 %v1224_v11, %v978_v16 }
 0x445   : > { %v987_v18 = vpack.c.bf16 %v979_v17, %v979_v17 }
 0x447   : > { %992 = vst.msk [vmem:[%s302_s29 + $0x4] sm:$0xf] %vm990_vm4, %v987_v18 }
 0x44a   : > { %v981_v19 = vpop.f32.mrf.mxu1 }
 0x44b   : > { %v982_v20 = vadd.f32 %v1224_v11, %v981_v19 }
 0x44d   : > { %v988_v21 = vpack.c.bf16 %v982_v20, %v982_v20 }
 0x44f   : > { %993 = vst.msk [vmem:[%s302_s29 + $0x8] sm:$0xf] %vm990_vm4, %v988_v21 }
 0x452   : > { %v983_v22 = vpop.f32.mrf.mxu1 }
 0x453   : > { %v984_v23 = vadd.f32 %v1224_v11, %v983_v22 }
 0x455   : > { %v989_v58 = vpack.c.bf16 %v984_v23, %v984_v23 }
 0x457   : > { %994 = vst.msk [vmem:[%s302_s29 + $0xc] sm:$0xf] %vm990_vm4, %v989_v58 }
 0x458 PF: > { %s15_s20 = sadd.s32 1, %s1311_s20   ;;  %s1559_s18 = smov %s1307_s19 }
 0x459   : > { %p12_p5 = scmp.ge.s32.totalorder %s15_s20, 4   ;;  %s1560_s19 = smov %s1562_s21 }
 0x45b   :  { %14 = sbr.rel (!%p12_p5) target bundleno = 2 (0x2), region = 76 }

// kernel: encoder_forward.8
= control target key start
LH: loop header
LB: loop body
LE: loop exit
PB: predicated region body
PF: predicated region fallthrough
CT: control target
= control target key end

     0   :  { %vm68_vm0 = vcmask 261120   ;;  %vm158_vm1 = vcmask 523264   ;;  %vm208_vm2 = vcmask 519168   ;;  %s757_s1 = inlined_call_operand.vmem [shape: bf16[32,64], index: 1, kind: input, shape index: {}]   ;;  %s758_s0 = inlined_call_operand.vmem [shape: f32[64,32], index: 0, kind: input, shape index: {}]   ;;  %s759_s2 = inlined_call_operand.vmem [shape: f32[1,64], index: 2, kind: input, shape index: {}]   ;;  %s760_s4 = inlined_call_operand.vmem [shape: f32[1,64], index: 4, kind: input, shape index: {}]   ;;  %s761_s3 = inlined_call_operand.vmem [shape: bf16[64,64], index: 3, kind: input, shape index: {}]   ;;  %s762_s5 = inlined_call_operand.vmem [shape: bf16[64,64], index: 5, kind: input, shape index: {}]   ;;  %s763_s7 = inlined_call_operand.vmem [shape: bf16[64,64], index: 7, kind: input, shape index: {}]   ;;  %s764_s6 = inlined_call_operand.vmem [shape: f32[1,64], index: 6, kind: input, shape index: {}]   ;;  %s765_s8 = inlined_call_operand.vmem [shape: f32[1,64], index: 8, kind: input, shape index: {}]   ;;  %s766_s9 = inlined_call_operand.vmem [shape: bf16[64,64], index: 9, kind: output, shape index: {0}]   ;;  %s767_s10 = inlined_call_operand.vmem [shape: bf16[64,64], index: 10, kind: output, shape index: {1}]   ;;  %s768_s11 = inlined_call_operand.vmem [shape: bf16[64,64], index: 11, kind: output, shape index: {2}]  }
   0x1   :  { %v464_v0 = vld [vmem:[%s757_s1 + $0x8] sm:$0xff]  ;;  %v463_v1 = vld [vmem:[%s757_s1] sm:$0xff]  ;;  %v38_v5 = vld [vmem:[%s758_s0 + $0x10] sm:$0xff] }
   0x2   :  { %87 = vmatpush.bf16.msra.mxu0 %v464_v0  ;;  %v36_v2 = vld [vmem:[%s758_s0] sm:$0xff]  ;;  %v37_v3 = vld [vmem:[%s758_s0 + $0x8] sm:$0xff]  ;;  %v39_v6 = vld [vmem:[%s758_s0 + $0x18] sm:$0xff] }
   0x3   :  { %v44_v4 = vpack.c.bf16 %v37_v3, %v36_v2  ;;  %v45_v7 = vpack.c.bf16 %v39_v6, %v38_v5  ;;  %v40_v8 = vld [vmem:[%s758_s0 + $0x20] sm:$0xff]  ;;  %v41_v9 = vld [vmem:[%s758_s0 + $0x28] sm:$0xff]  ;;  %v42_v11 = vld [vmem:[%s758_s0 + $0x30] sm:$0xff] }
   0x4   :  { %v46_v10 = vpack.c.bf16 %v41_v9, %v40_v8  ;;  %v43_v12 = vld [vmem:[%s758_s0 + $0x38] sm:$0xff]  ;;  %v467_v17 = vld [vmem:[%s761_s3 + $0x10] sm:$0xff]  ;;  %v466_v20 = vld [vmem:[%s761_s3 + $0x8] sm:$0xff] }
   0x5   :  { %v47_v13 = vpack.c.bf16 %v43_v12, %v42_v11  ;;  %v468_v14 = vld [vmem:[%s761_s3 + $0x18] sm:$0xff]  ;;  %v471_v18 = vld [vmem:[%s762_s5 + $0x10] sm:$0xff]  ;;  %v470_v21 = vld [vmem:[%s762_s5 + $0x8] sm:$0xff] }
   0x6   :  { %88 = vmatpush.bf16.msra.mxu0 %v463_v1  ;;  %v472_v15 = vld [vmem:[%s762_s5 + $0x18] sm:$0xff]  ;;  %175 = vmatpush.bf16.msra.mxu1 %v468_v14  ;;  %v475_v19 = vld [vmem:[%s763_s7 + $0x10] sm:$0xff]  ;;  %v474_v22 = vld [vmem:[%s763_s7 + $0x8] sm:$0xff] }
   0x7   :  { %v476_v16 = vld [vmem:[%s763_s7 + $0x18] sm:$0xff]  ;;  %257 = vmatpush.bf16.msra.mxu2 %v472_v15  ;;  %v465_v23 = vld [vmem:[%s761_s3] sm:$0xff] }
   0x8   :  { %338 = vmatpush.bf16.msra.mxu3 %v476_v16  ;;  %v469_v24 = vld [vmem:[%s762_s5] sm:$0xff] }
   0x9   :  { %399 = vmatmul.msk.bf16.vlgmr.msra.gmra.mxu0 %vm68_vm0, %v44_v4  ;;  %v473_v25 = vld [vmem:[%s763_s7] sm:$0xff] }
   0xa   :  { %176 = vmatpush.bf16.msra.mxu1 %v467_v17  ;;  %v477_v27 = vld [vmem:[%s759_s2] ss:$0 sm:$0xff] }
   0xb   :  { %258 = vmatpush.bf16.msra.mxu2 %v471_v18  ;;  %v625_v55 = vld [vmem:[%s760_s4] ss:$0 sm:$0xff] }
   0xc   :  { %339 = vmatpush.bf16.msra.mxu3 %v475_v19  ;;  %v631_v59 = vld [vmem:[%s764_s6] ss:$0 sm:$0xff] }
   0xd   :  { %v636_v60 = vld [vmem:[%s765_s8] ss:$0 sm:$0xff] }
   0xe   :  { %177 = vmatpush.bf16.msra.mxu1 %v466_v20 }
   0xf   :  { %259 = vmatpush.bf16.msra.mxu2 %v470_v21 }
  0x10   :  { %340 = vmatpush.bf16.msra.mxu3 %v474_v22 }
  0x12   :  { %178 = vmatpush.bf16.msra.mxu1 %v465_v23 }
  0x13   :  { %260 = vmatpush.bf16.msra.mxu2 %v469_v24 }
  0x14   :  { %341 = vmatpush.bf16.msra.mxu3 %v473_v25 }
  0x19   :  { %400 = vmatmul.msk.bf16.gmra.mxu0 %vm68_vm0, %v45_v7 }
  0x29   :  { %401 = vmatmul.msk.bf16.gmra.mxu0 %vm68_vm0, %v46_v10 }
  0x39   :  { %402 = vmatmul.msk.bf16.gmra.mxu0 %vm68_vm0, %v47_v13 }
  0x86   :  { %v90_v26 = vpop.f32.mrf.mxu0 }
  0x87   :  { %v91_v28 = vadd.f32 %v477_v27, %v90_v26 }
  0x89   :  { %v110_v31 = vmax.f32 %v91_v28, 0.0 }
  0x8e   :  { %v92_v29 = vpop.f32.mrf.mxu0 }
  0x8f   :  { %v93_v30 = vadd.f32 %v477_v27, %v92_v29 }
  0x91   :  { %v111_v32 = vmax.f32 %v93_v30, 0.0 }
  0x93   :  { %v118_v33 = vpack.c.bf16 %v111_v32, %v110_v31 }
  0x95   :  { %419 = vmatmul.msk.bf16.vlgmr.msra.gmra.mxu1 %vm158_vm1, %v118_v33  ;;  %439 = vmatmul.msk.bf16.vlgmr.msra.gmra.mxu2 %vm158_vm1, %v118_v33 }
  0x96   :  { %459 = vmatmul.msk.bf16.vlgmr.msra.gmra.mxu3 %vm158_vm1, %v118_v33  ;;  %v95_v34 = vpop.f32.mrf.mxu0 }
  0x97   :  { %v96_v35 = vadd.f32 %v477_v27, %v95_v34 }
  0x99   :  { %v112_v38 = vmax.f32 %v96_v35, 0.0 }
  0x9e   :  { %v97_v36 = vpop.f32.mrf.mxu0 }
  0x9f   :  { %v98_v37 = vadd.f32 %v477_v27, %v97_v36 }
  0xa1   :  { %v113_v39 = vmax.f32 %v98_v37, 0.0 }
  0xa3   :  { %v119_v40 = vpack.c.bf16 %v113_v39, %v112_v38 }
  0xa5   :  { %420 = vmatmul.msk.bf16.gmra.mxu1 %vm158_vm1, %v119_v40  ;;  %440 = vmatmul.msk.bf16.gmra.mxu2 %vm158_vm1, %v119_v40 }
  0xa6   :  { %460 = vmatmul.msk.bf16.gmra.mxu3 %vm158_vm1, %v119_v40  ;;  %v100_v41 = vpop.f32.mrf.mxu0 }
  0xa7   :  { %v101_v42 = vadd.f32 %v477_v27, %v100_v41 }
  0xa9   :  { %v114_v45 = vmax.f32 %v101_v42, 0.0 }
  0xae   :  { %v102_v43 = vpop.f32.mrf.mxu0 }
  0xaf   :  { %v103_v44 = vadd.f32 %v477_v27, %v102_v43 }
  0xb1   :  { %v115_v46 = vmax.f32 %v103_v44, 0.0 }
  0xb3   :  { %v120_v47 = vpack.c.bf16 %v115_v46, %v114_v45 }
  0xb5   :  { %421 = vmatmul.msk.bf16.gmra.mxu1 %vm158_vm1, %v120_v47  ;;  %441 = vmatmul.msk.bf16.gmra.mxu2 %vm158_vm1, %v120_v47 }
  0xb6   :  { %461 = vmatmul.msk.bf16.gmra.mxu3 %vm158_vm1, %v120_v47  ;;  %v105_v48 = vpop.f32.mrf.mxu0 }
  0xb7   :  { %v106_v49 = vadd.f32 %v477_v27, %v105_v48 }
  0xb9   :  { %v116_v52 = vmax.f32 %v106_v49, 0.0 }
  0xbe   :  { %v107_v50 = vpop.f32.mrf.mxu0 }
  0xbf   :  { %v108_v51 = vadd.f32 %v477_v27, %v107_v50 }
  0xc1   :  { %v117_v53 = vmax.f32 %v108_v51, 0.0 }
  0xc3   :  { %v121_v54 = vpack.c.bf16 %v117_v53, %v116_v52 }
  0xc5   :  { %422 = vmatmul.msk.bf16.gmra.mxu1 %vm158_vm1, %v121_v54  ;;  %442 = vmatmul.msk.bf16.gmra.mxu2 %vm158_vm1, %v121_v54 }
  0xc6   :  { %462 = vmatmul.msk.bf16.gmra.mxu3 %vm158_vm1, %v121_v54 }
 0x112   :  { %v180_v56 = vpop.f32.mrf.mxu1 }
 0x113   :  { %v181_v57 = vadd.f32 %v625_v55, %v180_v56 }
 0x115   :  { %v200_v58 = vpack.c.bf16 %v181_v57, %v181_v57 }
 0x117   :  { %209 = vst.msk [vmem:[%s766_s9] sm:$0xf] %vm208_vm2, %v200_v58 }
 0x118   :  { %v262_v61 = vpop.f32.mrf.mxu2 }
 0x119   :  { %v263_v62 = vadd.f32 %v631_v59, %v262_v61  ;;  %v343_v63 = vpop.f32.mrf.mxu3 }
 0x11a   :  { %v344_v0 = vadd.f32 %v636_v60, %v343_v63  ;;  %v182_v1 = vpop.f32.mrf.mxu1 }
 0x11b   :  { %v282_v2 = vpack.c.bf16 %v263_v62, %v263_v62  ;;  %v183_v3 = vadd.f32 %v625_v55, %v182_v1 }
 0x11c   :  { %v363_v4 = vpack.c.bf16 %v344_v0, %v344_v0 }
 0x11d   :  { %290 = vst.msk [vmem:[%s767_s10] sm:$0xf] %vm208_vm2, %v282_v2  ;;  %v201_v5 = vpack.c.bf16 %v183_v3, %v183_v3 }
 0x11e   :  { %371 = vst.msk [vmem:[%s768_s11] sm:$0xf] %vm208_vm2, %v363_v4 }
 0x11f   :  { %210 = vst.msk [vmem:[%s766_s9 + $0x4] sm:$0xf] %vm208_vm2, %v201_v5 }
 0x120   :  { %v264_v6 = vpop.f32.mrf.mxu2 }
 0x121   :  { %v265_v7 = vadd.f32 %v631_v59, %v264_v6  ;;  %v345_v8 = vpop.f32.mrf.mxu3 }
 0x122   :  { %v346_v9 = vadd.f32 %v636_v60, %v345_v8  ;;  %v185_v10 = vpop.f32.mrf.mxu1 }
 0x123   :  { %v283_v11 = vpack.c.bf16 %v265_v7, %v265_v7  ;;  %v186_v12 = vadd.f32 %v625_v55, %v185_v10 }
 0x124   :  { %v364_v13 = vpack.c.bf16 %v346_v9, %v346_v9 }
 0x125   :  { %291 = vst.msk [vmem:[%s767_s10 + $0x4] sm:$0xf] %vm208_vm2, %v283_v11  ;;  %v202_v14 = vpack.c.bf16 %v186_v12, %v186_v12 }
 0x126   :  { %372 = vst.msk [vmem:[%s768_s11 + $0x4] sm:$0xf] %vm208_vm2, %v364_v13 }
 0x127   :  { %211 = vst.msk [vmem:[%s766_s9 + $0x8] sm:$0xf] %vm208_vm2, %v202_v14 }
 0x128   :  { %v267_v15 = vpop.f32.mrf.mxu2 }
 0x129   :  { %v268_v16 = vadd.f32 %v631_v59, %v267_v15  ;;  %v348_v17 = vpop.f32.mrf.mxu3 }
 0x12a   :  { %v349_v18 = vadd.f32 %v636_v60, %v348_v17  ;;  %v187_v19 = vpop.f32.mrf.mxu1 }
 0x12b   :  { %v284_v20 = vpack.c.bf16 %v268_v16, %v268_v16  ;;  %v188_v21 = vadd.f32 %v625_v55, %v187_v19 }
 0x12c   :  { %v365_v22 = vpack.c.bf16 %v349_v18, %v349_v18 }
 0x12d   :  { %292 = vst.msk [vmem:[%s767_s10 + $0x8] sm:$0xf] %vm208_vm2, %v284_v20  ;;  %v203_v23 = vpack.c.bf16 %v188_v21, %v188_v21 }
 0x12e   :  { %373 = vst.msk [vmem:[%s768_s11 + $0x8] sm:$0xf] %vm208_vm2, %v365_v22 }
 0x12f   :  { %212 = vst.msk [vmem:[%s766_s9 + $0xc] sm:$0xf] %vm208_vm2, %v203_v23 }
 0x130   :  { %v269_v24 = vpop.f32.mrf.mxu2 }
 0x131   :  { %v270_v25 = vadd.f32 %v631_v59, %v269_v24  ;;  %v350_v26 = vpop.f32.mrf.mxu3 }
 0x132   :  { %v351_v27 = vadd.f32 %v636_v60, %v350_v26  ;;  %v190_v28 = vpop.f32.mrf.mxu1 }
 0x133   :  { %v285_v29 = vpack.c.bf16 %v270_v25, %v270_v25  ;;  %v191_v30 = vadd.f32 %v625_v55, %v190_v28 }
 0x134   :  { %v366_v31 = vpack.c.bf16 %v351_v27, %v351_v27 }
 0x135   :  { %293 = vst.msk [vmem:[%s767_s10 + $0xc] sm:$0xf] %vm208_vm2, %v285_v29  ;;  %v204_v32 = vpack.c.bf16 %v191_v30, %v191_v30 }
 0x136   :  { %374 = vst.msk [vmem:[%s768_s11 + $0xc] sm:$0xf] %vm208_vm2, %v366_v31 }
 0x137   :  { %213 = vst.msk [vmem:[%s766_s9 + $0x10] sm:$0xf] %vm208_vm2, %v204_v32 }
 0x138   :  { %v272_v33 = vpop.f32.mrf.mxu2 }
 0x139   :  { %v273_v34 = vadd.f32 %v631_v59, %v272_v33  ;;  %v353_v35 = vpop.f32.mrf.mxu3 }
 0x13a   :  { %v354_v36 = vadd.f32 %v636_v60, %v353_v35  ;;  %v192_v37 = vpop.f32.mrf.mxu1 }
 0x13b   :  { %v286_v38 = vpack.c.bf16 %v273_v34, %v273_v34  ;;  %v193_v39 = vadd.f32 %v625_v55, %v192_v37 }
 0x13c   :  { %v367_v40 = vpack.c.bf16 %v354_v36, %v354_v36 }
 0x13d   :  { %294 = vst.msk [vmem:[%s767_s10 + $0x10] sm:$0xf] %vm208_vm2, %v286_v38  ;;  %v205_v41 = vpack.c.bf16 %v193_v39, %v193_v39 }
 0x13e   :  { %375 = vst.msk [vmem:[%s768_s11 + $0x10] sm:$0xf] %vm208_vm2, %v367_v40 }
 0x13f   :  { %214 = vst.msk [vmem:[%s766_s9 + $0x14] sm:$0xf] %vm208_vm2, %v205_v41 }
 0x140   :  { %v274_v42 = vpop.f32.mrf.mxu2 }
 0x141   :  { %v275_v43 = vadd.f32 %v631_v59, %v274_v42  ;;  %v355_v44 = vpop.f32.mrf.mxu3 }
 0x142   :  { %v356_v45 = vadd.f32 %v636_v60, %v355_v44  ;;  %v195_v46 = vpop.f32.mrf.mxu1 }
 0x143   :  { %v287_v47 = vpack.c.bf16 %v275_v43, %v275_v43  ;;  %v196_v48 = vadd.f32 %v625_v55, %v195_v46 }
 0x144   :  { %v368_v49 = vpack.c.bf16 %v356_v45, %v356_v45 }
 0x145   :  { %295 = vst.msk [vmem:[%s767_s10 + $0x14] sm:$0xf] %vm208_vm2, %v287_v47  ;;  %v206_v50 = vpack.c.bf16 %v196_v48, %v196_v48 }
 0x146   :  { %376 = vst.msk [vmem:[%s768_s11 + $0x14] sm:$0xf] %vm208_vm2, %v368_v49 }
 0x147   :  { %215 = vst.msk [vmem:[%s766_s9 + $0x18] sm:$0xf] %vm208_vm2, %v206_v50 }
 0x148   :  { %v277_v51 = vpop.f32.mrf.mxu2 }
 0x149   :  { %v278_v52 = vadd.f32 %v631_v59, %v277_v51  ;;  %v358_v53 = vpop.f32.mrf.mxu3 }
 0x14a   :  { %v359_v54 = vadd.f32 %v636_v60, %v358_v53  ;;  %v197_v56 = vpop.f32.mrf.mxu1 }
 0x14b   :  { %v288_v57 = vpack.c.bf16 %v278_v52, %v278_v52  ;;  %v198_v58 = vadd.f32 %v625_v55, %v197_v56 }
 0x14c   :  { %v369_v61 = vpack.c.bf16 %v359_v54, %v359_v54 }
 0x14d   :  { %296 = vst.msk [vmem:[%s767_s10 + $0x18] sm:$0xf] %vm208_vm2, %v288_v57  ;;  %v207_v62 = vpack.c.bf16 %v198_v58, %v198_v58 }
 0x14e   :  { %377 = vst.msk [vmem:[%s768_s11 + $0x18] sm:$0xf] %vm208_vm2, %v369_v61 }
 0x14f   :  { %216 = vst.msk [vmem:[%s766_s9 + $0x1c] sm:$0xf] %vm208_vm2, %v207_v62 }
 0x150   :  { %v279_v63 = vpop.f32.mrf.mxu2 }
 0x151   :  { %v280_v55 = vadd.f32 %v631_v59, %v279_v63  ;;  %v360_v0 = vpop.f32.mrf.mxu3 }
 0x152   :  { %v361_v1 = vadd.f32 %v636_v60, %v360_v0 }
 0x153   :  { %v289_v2 = vpack.c.bf16 %v280_v55, %v280_v55 }
 0x154   :  { %v370_v3 = vpack.c.bf16 %v361_v1, %v361_v1 }
 0x155   :  { %297 = vst.msk [vmem:[%s767_s10 + $0x1c] sm:$0xf] %vm208_vm2, %v289_v2 }
 0x156   :  { %378 = vst.msk [vmem:[%s768_s11 + $0x1c] sm:$0xf] %vm208_vm2, %v370_v3 }

// kernel: encoder_forward.13
= control target key start
LH: loop header
LB: loop body
LE: loop exit
PB: predicated region body
PF: predicated region fallthrough
CT: control target
= control target key end

     0   :  { %s728_s0 = inlined_call_operand.vmem [shape: bf16[64,64], index: 0, kind: input, shape index: {}]   ;;  %s729_s1 = inlined_call_operand.vmem [shape: f32[64,32], index: 1, kind: input, shape index: {}]   ;;  %s730_s2 = inlined_call_operand.vmem [shape: bf16[64,32], index: 2, kind: input, shape index: {}]   ;;  %s731_s3 = inlined_call_operand.vmem [shape: f32[1,32], index: 3, kind: input, shape index: {}]   ;;  %s732_s4 = inlined_call_operand.vmem [shape: f32[1,32], index: 4, kind: input, shape index: {}]   ;;  %s733_s5 = inlined_call_operand.vmem [shape: f32[1,32], index: 5, kind: input, shape index: {}]   ;;  %s734_s6 = inlined_call_operand.hbm [shape: f32[64,32], index: 6, kind: output, shape index: {}]  }
   0x1   :  { %v432_v0 = vld [vmem:[%s730_s2 + $0x18] sm:$0xff]  ;;  %v431_v1 = vld [vmem:[%s730_s2 + $0x10] sm:$0xff] }
   0x2   :  { %106 = vmatpush.bf16.msra.mxu0 %v432_v0  ;;  %433 = vmatpush.bf16.msra.mxu1 %v432_v0 }
   0x3   :  { %434 = vmatpush.bf16.msra.mxu2 %v432_v0  ;;  %435 = vmatpush.bf16.msra.mxu3 %v432_v0 }
   0x4   :  { %11 = vsyncpa [#allocation3], 0  ;;  %v430_v2 = vld [vmem:[%s730_s2 + $0x8] sm:$0xff]  ;;  %v429_v3 = vld [vmem:[%s730_s2] sm:$0xff]  ;;  %vm89_vm0 = vcmask 523264   ;;  %vm155_vm1 = vcmask 261120  }
   0x5   :  { %v425_v4 = vld [vmem:[%s728_s0] sm:$0xff]  ;;  %v426_v5 = vld [vmem:[%s728_s0 + $0x8] sm:$0xff]  ;;  %v427_v6 = vld [vmem:[%s728_s0 + $0x10] sm:$0xff]  ;;  %v496_v57 = vmov 32.0   ;;  %s377_s9 = sshll.u32 %s734_s6, 4  ;;  %s498_s10 = smov 128   ;;  %s378_s9 = int_to_ptr.hbm [resolvable:$true] %s377_s9 }
   0x6   :  { %107 = vmatpush.bf16.msra.mxu0 %v431_v1  ;;  %436 = vmatpush.bf16.msra.mxu1 %v431_v1  ;;  %v428_v7 = vld [vmem:[%s728_s0 + $0x18] sm:$0xff]  ;;  %v449_v8 = vld [vmem:[%s731_s3] ss:$0 sm:$0xff]  ;;  %v141_v13 = vld [vmem:[%s729_s1 + $0x10] sm:$0xff]  ;;  %452 = vrcp.f32 %v496_v57  ;;  %s499_s11 = smov 8  }
   0x7   :  { %437 = vmatpush.bf16.msra.mxu2 %v431_v1  ;;  %438 = vmatpush.bf16.msra.mxu3 %v431_v1  ;;  %v139_v14 = vld [vmem:[%s729_s1] sm:$0xff]  ;;  %v142_v30 = vld [vmem:[%s729_s1 + $0x18] sm:$0xff]  ;;  %v140_v31 = vld [vmem:[%s729_s1 + $0x8] sm:$0xff] }
   0x8   :  { %v143_v28 = vld [vmem:[%s729_s1 + $0x20] sm:$0xff]  ;;  %v145_v46 = vld [vmem:[%s729_s1 + $0x30] sm:$0xff]  ;;  %v144_v47 = vld [vmem:[%s729_s1 + $0x28] sm:$0xff] }
   0x9   :  { %v146_v48 = vld [vmem:[%s729_s1 + $0x38] sm:$0xff] }
   0xa   :  { %108 = vmatpush.bf16.msra.mxu0 %v430_v2  ;;  %439 = vmatpush.bf16.msra.mxu1 %v430_v2 }
   0xb   :  { %440 = vmatpush.bf16.msra.mxu2 %v430_v2  ;;  %441 = vmatpush.bf16.msra.mxu3 %v430_v2 }
   0xc   :  { %v453_v58 = vpop.eup %452 }
   0xd   :  { %v181_v59 = vmul.f32 32.0, %v453_v58  ;;  %vm185_vm2 = vweird.f32 %v453_v58 }
   0xe   :  { %109 = vmatpush.bf16.msra.mxu0 %v429_v3  ;;  %442 = vmatpush.bf16.msra.mxu1 %v429_v3 }
   0xf   :  { %443 = vmatpush.bf16.msra.mxu2 %v429_v3  ;;  %444 = vmatpush.bf16.msra.mxu3 %v429_v3  ;;  %v182_v60 = vsub.f32 1.0, %v181_v59 }
  0x11   :  { %421 = vmatmul.msk.bf16.vlgmr.msra.gmra.mxu0 %vm89_vm0, %v425_v4  ;;  %422 = vmatmul.msk.bf16.vlgmr.msra.gmra.mxu1 %vm89_vm0, %v426_v5  ;;  %v183_v61 = vmul.f32 %v453_v58, %v182_v60 }
  0x12   :  { %423 = vmatmul.msk.bf16.vlgmr.msra.gmra.mxu2 %vm89_vm0, %v427_v6  ;;  %424 = vmatmul.msk.bf16.vlgmr.msra.gmra.mxu3 %vm89_vm0, %v428_v7 }
  0x13   :  { %v184_v62 = vadd.f32 %v453_v58, %v183_v61 }
  0x15   :  { %v594_v63 = vsel %vm185_vm2, %v453_v58, %v184_v62 }
  0x8e   :  { %v111_v9 = vpop.f32.mrf.mxu0  ;;  %v116_v10 = vpop.f32.mrf.mxu1 }
  0x8f   :  { %v112_v11 = vadd.f32 %v449_v8, %v111_v9  ;;  %v117_v12 = vadd.f32 %v449_v8, %v116_v10 }
  0x91   :  { %v131_v15 = vmax.f32 %v112_v11, 0.0  ;;  %v133_v16 = vmax.f32 %v117_v12, 0.0 }
  0x93   :  { %v149_v17 = vadd.f32 %v141_v13, %v133_v16  ;;  %v147_v18 = vadd.f32 %v139_v14, %v131_v15 }
  0x95   :  { %v121_v19 = vpop.f32.mrf.mxu2  ;;  %v126_v20 = vpop.f32.mrf.mxu3  ;;  %v162_v21 = vsel %vm155_vm1, %v149_v17, 0.0  ;;  %v156_v22 = vsel %vm155_vm1, %v147_v18, 0.0 }
  0x96   :  { %v122_v23 = vadd.f32 %v449_v8, %v121_v19  ;;  %v118_v24 = vpop.f32.mrf.mxu1  ;;  %163 = vadd.xlane.f32.xlu1 %v162_v21  ;;  %v113_v25 = vpop.f32.mrf.mxu0  ;;  %157 = vadd.xlane.f32.xlu0 %v156_v22  ;;  %v127_v32 = vadd.f32 %v449_v8, %v126_v20 }
  0x97   :  { %v119_v26 = vadd.f32 %v449_v8, %v118_v24  ;;  %v114_v27 = vadd.f32 %v449_v8, %v113_v25 }
  0x98   :  { %v135_v29 = vmax.f32 %v122_v23, 0.0  ;;  %v137_v39 = vmax.f32 %v127_v32, 0.0 }
  0x99   :  { %v134_v33 = vmax.f32 %v119_v26, 0.0  ;;  %v132_v34 = vmax.f32 %v114_v27, 0.0 }
  0x9a   :  { %v151_v35 = vadd.f32 %v143_v28, %v135_v29  ;;  %v153_v51 = vadd.f32 %v145_v46, %v137_v39 }
  0x9b   :  { %v150_v36 = vadd.f32 %v142_v30, %v134_v33  ;;  %v148_v37 = vadd.f32 %v140_v31, %v132_v34 }
  0x9c   :  { %v168_v38 = vsel %vm155_vm1, %v151_v35, 0.0  ;;  %v174_v56 = vsel %vm155_vm1, %v153_v51, 0.0 }
  0x9d   :  { %v123_v40 = vpop.f32.mrf.mxu2  ;;  %v128_v41 = vpop.f32.mrf.mxu3  ;;  %169 = vadd.xlane.f32.xlu2 %v168_v38  ;;  %v165_v42 = vsel %vm155_vm1, %v150_v36, 0.0  ;;  %v159_v43 = vsel %vm155_vm1, %v148_v37, 0.0 }
  0x9e   :  { %v124_v44 = vadd.f32 %v449_v8, %v123_v40  ;;  %v129_v45 = vadd.f32 %v449_v8, %v128_v41  ;;  %166 = vadd.xlane.f32.xlu1 %v165_v42  ;;  %160 = vadd.xlane.f32.xlu0 %v159_v43 }
  0xa0   :  { %v136_v49 = vmax.f32 %v124_v44, 0.0  ;;  %v138_v50 = vmax.f32 %v129_v45, 0.0 }
  0xa2   :  { %v152_v52 = vadd.f32 %v144_v47, %v136_v49  ;;  %v154_v53 = vadd.f32 %v146_v48, %v138_v50 }
  0xa4   :  { %v171_v54 = vsel %vm155_vm1, %v152_v52, 0.0  ;;  %v177_v55 = vsel %vm155_vm1, %v154_v53, 0.0 }
  0xa5   :  { %172 = vadd.xlane.f32.xlu2 %v171_v54 }
  0xa6   :  { %178 = vadd.xlane.f32.xlu1 %v177_v55  ;;  %175 = vadd.xlane.f32.xlu0 %v174_v56 }
 0x109   :  { %v164_v0 = vpop.xlane.xlu1 %163  ;;  %v158_v1 = vpop.xlane.xlu0 %157 }
 0x10a   :  { %v189_v2 = vmul.f32 %v594_v63, %v164_v0  ;;  %v187_v3 = vmul.f32 %v594_v63, %v158_v1 }
 0x10c   :  { %v598_v4 = vsub.f32 %v149_v17, %v189_v2  ;;  %v600_v5 = vsub.f32 %v147_v18, %v187_v3 }
 0x10e   :  { %v205_v6 = vmul.f32 %v598_v4, %v598_v4  ;;  %v203_v7 = vmul.f32 %v600_v5, %v600_v5 }
 0x110   :  { %v170_v8 = vpop.xlane.xlu2 %169  ;;  %v217_v9 = vsel %vm155_vm1, %v205_v6, 0.0  ;;  %v211_v10 = vsel %vm155_vm1, %v203_v7, 0.0 }
 0x111   :  { %v191_v11 = vmul.f32 %v594_v63, %v170_v8  ;;  %218 = vadd.xlane.f32.xlu1 %v217_v9  ;;  %v167_v12 = vpop.xlane.xlu1 %166  ;;  %212 = vadd.xlane.f32.xlu2 %v211_v10  ;;  %v161_v13 = vpop.xlane.xlu0 %160 }
 0x112   :  { %v190_v14 = vmul.f32 %v594_v63, %v167_v12  ;;  %v188_v16 = vmul.f32 %v594_v63, %v161_v13 }
 0x113   :  { %v610_v15 = vsub.f32 %v151_v35, %v191_v11 }
 0x114   :  { %v613_v17 = vsub.f32 %v150_v36, %v190_v14  ;;  %v619_v20 = vsub.f32 %v148_v37, %v188_v16  ;;  %v669_v16 = vld [vmem:[%s732_s4] ss:$0 sm:$0xff]  ;;  %s497_s4 = smov [#allocation2]  }
 0x115   :  { %v207_v18 = vmul.f32 %v610_v15, %v610_v15 }
 0x116   :  { %v206_v19 = vmul.f32 %v613_v17, %v613_v17  ;;  %v204_v30 = vmul.f32 %v619_v20, %v619_v20 }
 0x117   :  { %v223_v21 = vsel %vm155_vm1, %v207_v18, 0.0 }
 0x118   :  { %v173_v22 = vpop.xlane.xlu2 %172  ;;  %224 = vadd.xlane.f32.xlu0 %v223_v21  ;;  %v220_v23 = vsel %vm155_vm1, %v206_v19, 0.0  ;;  %v214_v36 = vsel %vm155_vm1, %v204_v30, 0.0 }
 0x119   :  { %v192_v24 = vmul.f32 %v594_v63, %v173_v22  ;;  %v179_v25 = vpop.xlane.xlu1 %178  ;;  %221 = vadd.xlane.f32.xlu2 %v220_v23  ;;  %v176_v26 = vpop.xlane.xlu0 %175  ;;  %v676_v23 = vld [vmem:[%s733_s5] ss:$0 sm:$0xff]  ;;  %s375_s5 = sshll.u32 %s497_s4, 4  ;;  %s376_s5 = int_to_ptr.vmem [resolvable:$true] %s375_s5 }
 0x11a   :  { %v193_v27 = vmul.f32 %v594_v63, %v176_v26  ;;  %v194_v29 = vmul.f32 %v594_v63, %v179_v25 }
 0x11b   :  { %v625_v28 = vsub.f32 %v152_v52, %v192_v24 }
 0x11c   :  { %v630_v31 = vsub.f32 %v153_v51, %v193_v27  ;;  %v636_v34 = vsub.f32 %v154_v53, %v194_v29 }
 0x11d   :  { %v208_v32 = vmul.f32 %v625_v28, %v625_v28 }
 0x11e   :  { %v209_v33 = vmul.f32 %v630_v31, %v630_v31  ;;  %v210_v38 = vmul.f32 %v636_v34, %v636_v34 }
 0x11f   :  { %v226_v35 = vsel %vm155_vm1, %v208_v32, 0.0 }
 0x120   :  { %227 = vadd.xlane.f32.xlu1 %v226_v35  ;;  %215 = vadd.xlane.f32.xlu0 %v214_v36  ;;  %v229_v37 = vsel %vm155_vm1, %v209_v33, 0.0  ;;  %v232_v39 = vsel %vm155_vm1, %v210_v38, 0.0 }
 0x121   :  { %230 = vadd.xlane.f32.xlu2 %v229_v37 }
 0x128   :  { %233 = vadd.xlane.f32.xlu0 %v232_v39 }
 0x184   :  { %v219_v40 = vpop.xlane.xlu1 %218  ;;  %v213_v41 = vpop.xlane.xlu2 %212 }
 0x185   :  { %v237_v42 = vmul.f32 %v219_v40, %v594_v63  ;;  %v235_v43 = vmul.f32 %v213_v41, %v594_v63 }
 0x187   :  { %v245_v44 = vadd.f32 1e-05, %v237_v42  ;;  %v243_v45 = vadd.f32 1e-05, %v235_v43 }
 0x189   :  { %454 = vrsqrt.f32 %v245_v44  ;;  %vm277_vm5 = vweird.f32 %v245_v44  ;;  %vm257_vm7 = vweird.f32 %v243_v45 }
 0x18a   :  { %456 = vrsqrt.f32 %v243_v45 }
 0x18b   :  { %v225_v46 = vpop.xlane.xlu0 %224 }
 0x18c   :  { %v239_v47 = vmul.f32 %v225_v46, %v594_v63  ;;  %v222_v48 = vpop.xlane.xlu2 %221 }
 0x18d   :  { %v238_v49 = vmul.f32 %v222_v48, %v594_v63 }
 0x18e   :  { %v648_v50 = vadd.f32 1e-05, %v239_v47 }
 0x18f   :  { %v455_v51 = vpop.eup %454  ;;  %v650_v52 = vadd.f32 1e-05, %v238_v49 }
 0x190   :  { %v457_v53 = vpop.eup %456  ;;  %v272_v54 = vmul.f32 %v455_v51, %v245_v44  ;;  %458 = vrsqrt.f32 %v648_v50  ;;  %vm278_vm3 = vweird.f32 %v455_v51  ;;  %vm297_vm11 = vweird.f32 %v648_v50 }
 0x191   :  { %v252_v55 = vmul.f32 %v457_v53, %v243_v45  ;;  %460 = vrsqrt.f32 %v650_v52  ;;  %vm258_vm4 = vweird.f32 %v457_v53  ;;  %vm279_vm6 = vmor %vm277_vm5, %vm278_vm3  ;;  %vm287_vm13 = vweird.f32 %v650_v52 }
 0x192   :  { %v273_v56 = vmul.f32 %v455_v51, %v272_v54  ;;  %vm259_vm8 = vmor %vm257_vm7, %vm258_vm4 }
 0x193   :  { %v253_v57 = vmul.f32 %v457_v53, %v252_v55  ;;  %v228_v58 = vpop.xlane.xlu1 %227  ;;  %v216_v59 = vpop.xlane.xlu0 %215 }
 0x194   :  { %v274_v60 = vmul.f32 0.5, %v273_v56  ;;  %v240_v61 = vmul.f32 %v228_v58, %v594_v63  ;;  %v236_v62 = vmul.f32 %v216_v59, %v594_v63  ;;  %v231_v0 = vpop.xlane.xlu2 %230 }
 0x195   :  { %v254_v1 = vmul.f32 0.5, %v253_v57  ;;  %v241_v2 = vmul.f32 %v231_v0, %v594_v63 }
 0x196   :  { %v459_v3 = vpop.eup %458  ;;  %v275_v6 = vsub.f32 1.5, %v274_v60  ;;  %v657_v7 = vadd.f32 1e-05, %v240_v61  ;;  %v659_v8 = vadd.f32 1e-05, %v236_v62 }
 0x197   :  { %v461_v9 = vpop.eup %460  ;;  %v255_v10 = vsub.f32 1.5, %v254_v1  ;;  %v292_v11 = vmul.f32 %v459_v3, %v648_v50  ;;  %v662_v12 = vadd.f32 1e-05, %v241_v2  ;;  %vm298_vm9 = vweird.f32 %v459_v3 }
 0x198   :  { %v276_v13 = vmul.f32 %v455_v51, %v275_v6  ;;  %v282_v14 = vmul.f32 %v461_v9, %v650_v52  ;;  %462 = vrsqrt.f32 %v657_v7  ;;  %vm288_vm10 = vweird.f32 %v461_v9  ;;  %vm299_vm12 = vmor %vm297_vm11, %vm298_vm9 }
 0x199   :  { %v256_v18 = vmul.f32 %v457_v53, %v255_v10  ;;  %v293_v19 = vmul.f32 %v459_v3, %v292_v11  ;;  %464 = vrsqrt.f32 %v659_v8  ;;  %vm289_vm14 = vmor %vm287_vm13, %vm288_vm10  ;;  %vm307_vm0 = vweird.f32 %v657_v7 }
 0x19a   :  { %v280_v21 = vsel %vm279_vm6, %v455_v51, %v276_v13  ;;  %v283_v22 = vmul.f32 %v461_v9, %v282_v14  ;;  %466 = vrsqrt.f32 %v662_v12  ;;  %vm267_vm5 = vweird.f32 %v659_v8 }
 0x19b   :  { %v333_v24 = vmul.f32 %v280_v21, %v598_v4  ;;  %v260_v25 = vsel %vm259_vm8, %v457_v53, %v256_v18  ;;  %v294_v26 = vmul.f32 0.5, %v293_v19  ;;  %v234_v27 = vpop.xlane.xlu0 %233  ;;  %vm317_vm7 = vweird.f32 %v662_v12 }
 0x19c   :  { %v331_v29 = vmul.f32 %v260_v25, %v600_v5  ;;  %v284_v30 = vmul.f32 0.5, %v283_v22  ;;  %v242_v32 = vmul.f32 %v234_v27, %v594_v63 }
 0x19d   :  { %v345_v33 = vmul.f32 %v669_v16, %v333_v24  ;;  %v295_v35 = vsub.f32 1.5, %v294_v26 }
 0x19e   :  { %v463_v36 = vpop.eup %462  ;;  %v343_v37 = vmul.f32 %v669_v16, %v331_v29  ;;  %v285_v38 = vsub.f32 1.5, %v284_v30  ;;  %v683_v39 = vadd.f32 1e-05, %v242_v32 }
 0x19f   :  { %v465_v4 = vpop.eup %464  ;;  %v357_v40 = vadd.f32 %v676_v23, %v345_v33  ;;  %v296_v41 = vmul.f32 %v459_v3, %v295_v35  ;;  %v302_v5 = vmul.f32 %v463_v36, %v657_v7  ;;  %vm308_vm15 = vweird.f32 %v463_v36 }
 0x1a0   :  { %v467_v63 = vpop.eup %466  ;;  %v355_v42 = vadd.f32 %v676_v23, %v343_v37  ;;  %v286_v43 = vmul.f32 %v461_v9, %v285_v38  ;;  %v262_v44 = vmul.f32 %v465_v4, %v659_v8  ;;  %468 = vrsqrt.f32 %v683_v39  ;;  %vm309_vm4 = vmor %vm307_vm0, %vm308_vm15 }
 0x1a1   :  { %365 = vst.msk [vmem:[#allocation2 + $0x10] sm:$0xff] %vm155_vm1, %v357_v40  ;;  %v300_v45 = vsel %vm299_vm12, %v459_v3, %v296_v41  ;;  %v303_v46 = vmul.f32 %v463_v36, %v302_v5  ;;  %v312_v47 = vmul.f32 %v467_v63, %v662_v12  ;;  %vm268_vm2 = vweird.f32 %v465_v4 }
 0x1a2   :  { %363 = vst.msk [vmem:[#allocation2] sm:$0xff] %vm155_vm1, %v355_v42  ;;  %v335_v48 = vmul.f32 %v300_v45, %v610_v15  ;;  %v290_v49 = vsel %vm289_vm14, %v461_v9, %v286_v43  ;;  %v263_v50 = vmul.f32 %v465_v4, %v262_v44  ;;  %vm318_vm3 = vweird.f32 %v467_v63  ;;  %vm269_vm6 = vmor %vm267_vm5, %vm268_vm2 }
 0x1a3   :  { %v334_v51 = vmul.f32 %v290_v49, %v613_v17  ;;  %v304_v52 = vmul.f32 0.5, %v303_v46  ;;  %v313_v53 = vmul.f32 %v467_v63, %v312_v47  ;;  %vm319_vm8 = vmor %vm317_vm7, %vm318_vm3  ;;  %vm327_vm10 = vweird.f32 %v683_v39 }
 0x1a4   :  { %v347_v54 = vmul.f32 %v669_v16, %v335_v48  ;;  %v264_v55 = vmul.f32 0.5, %v263_v50 }
 0x1a5   :  { %v346_v56 = vmul.f32 %v669_v16, %v334_v51  ;;  %v305_v57 = vsub.f32 1.5, %v304_v52  ;;  %v314_v58 = vmul.f32 0.5, %v313_v53 }
 0x1a6   :  { %v359_v59 = vadd.f32 %v676_v23, %v347_v54  ;;  %v265_v15 = vsub.f32 1.5, %v264_v55  ;;  %v469_v62 = vpop.eup %468 }
 0x1a7   :  { %v358_v60 = vadd.f32 %v676_v23, %v346_v56  ;;  %v306_v61 = vmul.f32 %v463_v36, %v305_v57  ;;  %v315_v17 = vsub.f32 1.5, %v314_v58  ;;  %v322_v3 = vmul.f32 %v469_v62, %v683_v39 }
 0x1a8   :  { %367 = vst.msk [vmem:[#allocation2 + $0x20] sm:$0xff] %vm155_vm1, %v359_v59  ;;  %v266_v0 = vmul.f32 %v465_v4, %v265_v15  ;;  %vm328_vm9 = vweird.f32 %v469_v62 }
 0x1a9   :  { %366 = vst.msk [vmem:[#allocation2 + $0x18] sm:$0xff] %vm155_vm1, %v358_v60  ;;  %v310_v1 = vsel %vm309_vm4, %v463_v36, %v306_v61  ;;  %v316_v2 = vmul.f32 %v467_v63, %v315_v17  ;;  %v323_v11 = vmul.f32 %v469_v62, %v322_v3  ;;  %vm329_vm11 = vmor %vm327_vm10, %vm328_vm9 }
 0x1aa   :  { %v336_v6 = vmul.f32 %v310_v1, %v625_v28  ;;  %v270_v7 = vsel %vm269_vm6, %v465_v4, %v266_v0 }
 0x1ab   :  { %v332_v9 = vmul.f32 %v270_v7, %v619_v20  ;;  %v320_v10 = vsel %vm319_vm8, %v467_v63, %v316_v2  ;;  %v324_v18 = vmul.f32 0.5, %v323_v11 }
 0x1ac   :  { %v348_v13 = vmul.f32 %v669_v16, %v336_v6  ;;  %v337_v8 = vmul.f32 %v320_v10, %v630_v31 }
 0x1ad   :  { %v344_v14 = vmul.f32 %v669_v16, %v332_v9  ;;  %v325_v28 = vsub.f32 1.5, %v324_v18 }
 0x1ae   :  { %v360_v19 = vadd.f32 %v676_v23, %v348_v13  ;;  %v349_v12 = vmul.f32 %v669_v16, %v337_v8 }
 0x1af   :  { %v356_v21 = vadd.f32 %v676_v23, %v344_v14  ;;  %v326_v22 = vmul.f32 %v469_v62, %v325_v28 }
 0x1b0   :  { %368 = vst.msk [vmem:[#allocation2 + $0x28] sm:$0xff] %vm155_vm1, %v360_v19  ;;  %v361_v20 = vadd.f32 %v676_v23, %v349_v12 }
 0x1b1   :  { %364 = vst.msk [vmem:[#allocation2 + $0x8] sm:$0xff] %vm155_vm1, %v356_v21  ;;  %v330_v31 = vsel %vm329_vm11, %v469_v62, %v326_v22 }
 0x1b2   :  { %369 = vst.msk [vmem:[#allocation2 + $0x30] sm:$0xff] %vm155_vm1, %v361_v20  ;;  %v338_v24 = vmul.f32 %v330_v31, %v636_v34 }
 0x1b4   :  { %v350_v25 = vmul.f32 %v669_v16, %v338_v24 }
 0x1b6   :  { %v362_v26 = vadd.f32 %v676_v23, %v350_v25 }
 0x1b8   :  { %370 = vst.msk [vmem:[#allocation2 + $0x38] sm:$0xff] %vm155_vm1, %v362_v26 }
 0x1b9   :  { %383 = dma.vmem_to_hbm [thread:$0]  %s376_s5, 1024, %s378_s9, [#allocation3], %s498_s10, %s498_s10, %s499_s11  }
 0x1ba   :  { %494 = dma.done.wait [#allocation3], 1024  }
 0x1bb   :  { %495 = vsyncadd [#allocation3], 4294966272 }
 0x1bc   :  { %388 = vsyncpa [#allocation3], 1 }

// kernel: encoder_forward.10
= control target key start
LH: loop header
LB: loop body
LE: loop exit
PB: predicated region body
PF: predicated region fallthrough
CT: control target
= control target key end

     0   :  { %vm88_vm0 = vcmask 523264   ;;  %vm154_vm1 = vcmask 261120   ;;  %v452_v57 = vmov 32.0   ;;  %s710_s2 = inlined_call_operand.vmem [shape: bf16[64,32], index: 2, kind: input, shape index: {}]   ;;  %s711_s3 = inlined_call_operand.vmem [shape: f32[1,32], index: 3, kind: input, shape index: {}]   ;;  %s712_s0 = inlined_call_operand.vmem [shape: bf16[64,64], index: 0, kind: input, shape index: {}]   ;;  %s713_s1 = inlined_call_operand.vmem [shape: f32[64,32], index: 1, kind: input, shape index: {}]   ;;  %s714_s4 = inlined_call_operand.vmem [shape: f32[1,32], index: 4, kind: input, shape index: {}]   ;;  %s715_s5 = inlined_call_operand.vmem [shape: f32[1,32], index: 5, kind: input, shape index: {}]   ;;  %s716_s6 = inlined_call_operand.vmem [shape: f32[64,32], index: 6, kind: output, shape index: {}]  }
   0x1   :  { %v417_v0 = vld [vmem:[%s710_s2 + $0x18] sm:$0xff]  ;;  %v416_v1 = vld [vmem:[%s710_s2 + $0x10] sm:$0xff]  ;;  %v415_v2 = vld [vmem:[%s710_s2 + $0x8] sm:$0xff]  ;;  %434 = vrcp.f32 %v452_v57 }
   0x2   :  { %105 = vmatpush.bf16.msra.mxu0 %v417_v0  ;;  %418 = vmatpush.bf16.msra.mxu1 %v417_v0  ;;  %v414_v3 = vld [vmem:[%s710_s2] sm:$0xff]  ;;  %v411_v5 = vld [vmem:[%s712_s0 + $0x8] sm:$0xff]  ;;  %v412_v6 = vld [vmem:[%s712_s0 + $0x10] sm:$0xff] }
   0x3   :  { %419 = vmatpush.bf16.msra.mxu2 %v417_v0  ;;  %420 = vmatpush.bf16.msra.mxu3 %v417_v0  ;;  %v410_v4 = vld [vmem:[%s712_s0] sm:$0xff]  ;;  %v413_v7 = vld [vmem:[%s712_s0 + $0x18] sm:$0xff]  ;;  %v140_v13 = vld [vmem:[%s713_s1 + $0x10] sm:$0xff] }
   0x4   :  { %v431_v8 = vld [vmem:[%s711_s3] ss:$0 sm:$0xff]  ;;  %v141_v30 = vld [vmem:[%s713_s1 + $0x18] sm:$0xff]  ;;  %v139_v31 = vld [vmem:[%s713_s1 + $0x8] sm:$0xff] }
   0x5   :  { %v138_v14 = vld [vmem:[%s713_s1] sm:$0xff]  ;;  %v144_v46 = vld [vmem:[%s713_s1 + $0x30] sm:$0xff]  ;;  %v143_v47 = vld [vmem:[%s713_s1 + $0x28] sm:$0xff] }
   0x6   :  { %106 = vmatpush.bf16.msra.mxu0 %v416_v1  ;;  %421 = vmatpush.bf16.msra.mxu1 %v416_v1  ;;  %v142_v28 = vld [vmem:[%s713_s1 + $0x20] sm:$0xff]  ;;  %v145_v48 = vld [vmem:[%s713_s1 + $0x38] sm:$0xff] }
   0x7   :  { %422 = vmatpush.bf16.msra.mxu2 %v416_v1  ;;  %423 = vmatpush.bf16.msra.mxu3 %v416_v1  ;;  %v435_v58 = vpop.eup %434 }
   0x8   :  { %v180_v59 = vmul.f32 32.0, %v435_v58  ;;  %vm184_vm2 = vweird.f32 %v435_v58 }
   0xa   :  { %107 = vmatpush.bf16.msra.mxu0 %v415_v2  ;;  %424 = vmatpush.bf16.msra.mxu1 %v415_v2  ;;  %v181_v60 = vsub.f32 1.0, %v180_v59 }
   0xb   :  { %425 = vmatpush.bf16.msra.mxu2 %v415_v2  ;;  %426 = vmatpush.bf16.msra.mxu3 %v415_v2 }
   0xc   :  { %v182_v61 = vmul.f32 %v435_v58, %v181_v60 }
   0xe   :  { %108 = vmatpush.bf16.msra.mxu0 %v414_v3  ;;  %427 = vmatpush.bf16.msra.mxu1 %v414_v3  ;;  %v183_v62 = vadd.f32 %v435_v58, %v182_v61 }
   0xf   :  { %428 = vmatpush.bf16.msra.mxu2 %v414_v3  ;;  %429 = vmatpush.bf16.msra.mxu3 %v414_v3 }
  0x10   :  { %v553_v63 = vsel %vm184_vm2, %v435_v58, %v183_v62 }
  0x11   :  { %406 = vmatmul.msk.bf16.vlgmr.msra.gmra.mxu0 %vm88_vm0, %v410_v4  ;;  %407 = vmatmul.msk.bf16.vlgmr.msra.gmra.mxu1 %vm88_vm0, %v411_v5 }
  0x12   :  { %408 = vmatmul.msk.bf16.vlgmr.msra.gmra.mxu2 %vm88_vm0, %v412_v6  ;;  %409 = vmatmul.msk.bf16.vlgmr.msra.gmra.mxu3 %vm88_vm0, %v413_v7 }
  0x8e   :  { %v110_v9 = vpop.f32.mrf.mxu0  ;;  %v115_v10 = vpop.f32.mrf.mxu1 }
  0x8f   :  { %v111_v11 = vadd.f32 %v431_v8, %v110_v9  ;;  %v116_v12 = vadd.f32 %v431_v8, %v115_v10 }
  0x91   :  { %v130_v15 = vmax.f32 %v111_v11, 0.0  ;;  %v132_v16 = vmax.f32 %v116_v12, 0.0 }
  0x93   :  { %v521_v17 = vadd.f32 %v140_v13, %v132_v16  ;;  %v523_v18 = vadd.f32 %v138_v14, %v130_v15 }
  0x95   :  { %v120_v19 = vpop.f32.mrf.mxu2  ;;  %v125_v20 = vpop.f32.mrf.mxu3  ;;  %v161_v21 = vsel %vm154_vm1, %v521_v17, 0.0  ;;  %v155_v22 = vsel %vm154_vm1, %v523_v18, 0.0 }
  0x96   :  { %v121_v23 = vadd.f32 %v431_v8, %v120_v19  ;;  %v117_v24 = vpop.f32.mrf.mxu1  ;;  %162 = vadd.xlane.f32.xlu1 %v161_v21  ;;  %v112_v25 = vpop.f32.mrf.mxu0  ;;  %156 = vadd.xlane.f32.xlu0 %v155_v22  ;;  %v126_v32 = vadd.f32 %v431_v8, %v125_v20 }
  0x97   :  { %v118_v26 = vadd.f32 %v431_v8, %v117_v24  ;;  %v113_v27 = vadd.f32 %v431_v8, %v112_v25 }
  0x98   :  { %v134_v29 = vmax.f32 %v121_v23, 0.0  ;;  %v136_v39 = vmax.f32 %v126_v32, 0.0 }
  0x99   :  { %v133_v33 = vmax.f32 %v118_v26, 0.0  ;;  %v131_v34 = vmax.f32 %v113_v27, 0.0 }
  0x9a   :  { %v150_v35 = vadd.f32 %v142_v28, %v134_v29  ;;  %v152_v51 = vadd.f32 %v144_v46, %v136_v39 }
  0x9b   :  { %v149_v36 = vadd.f32 %v141_v30, %v133_v33  ;;  %v147_v37 = vadd.f32 %v139_v31, %v131_v34 }
  0x9c   :  { %v167_v38 = vsel %vm154_vm1, %v150_v35, 0.0  ;;  %v173_v56 = vsel %vm154_vm1, %v152_v51, 0.0 }
  0x9d   :  { %v122_v40 = vpop.f32.mrf.mxu2  ;;  %v127_v41 = vpop.f32.mrf.mxu3  ;;  %168 = vadd.xlane.f32.xlu2 %v167_v38  ;;  %v164_v42 = vsel %vm154_vm1, %v149_v36, 0.0  ;;  %v158_v43 = vsel %vm154_vm1, %v147_v37, 0.0 }
  0x9e   :  { %v123_v44 = vadd.f32 %v431_v8, %v122_v40  ;;  %v128_v45 = vadd.f32 %v431_v8, %v127_v41  ;;  %165 = vadd.xlane.f32.xlu1 %v164_v42  ;;  %159 = vadd.xlane.f32.xlu0 %v158_v43 }
  0xa0   :  { %v135_v49 = vmax.f32 %v123_v44, 0.0  ;;  %v137_v50 = vmax.f32 %v128_v45, 0.0 }
  0xa2   :  { %v151_v52 = vadd.f32 %v143_v47, %v135_v49  ;;  %v153_v53 = vadd.f32 %v145_v48, %v137_v50 }
  0xa4   :  { %v170_v54 = vsel %vm154_vm1, %v151_v52, 0.0  ;;  %v176_v55 = vsel %vm154_vm1, %v153_v53, 0.0 }
  0xa5   :  { %171 = vadd.xlane.f32.xlu2 %v170_v54 }
  0xa6   :  { %177 = vadd.xlane.f32.xlu1 %v176_v55  ;;  %174 = vadd.xlane.f32.xlu0 %v173_v56 }
 0x109   :  { %v163_v0 = vpop.xlane.xlu1 %162  ;;  %v157_v1 = vpop.xlane.xlu0 %156 }
 0x10a   :  { %v188_v2 = vmul.f32 %v553_v63, %v163_v0  ;;  %v186_v3 = vmul.f32 %v553_v63, %v157_v1 }
 0x10c   :  { %v558_v4 = vsub.f32 %v521_v17, %v188_v2  ;;  %v561_v5 = vsub.f32 %v523_v18, %v186_v3 }
 0x10e   :  { %v204_v6 = vmul.f32 %v558_v4, %v558_v4  ;;  %v202_v7 = vmul.f32 %v561_v5, %v561_v5 }
 0x110   :  { %v169_v8 = vpop.xlane.xlu2 %168  ;;  %v216_v9 = vsel %vm154_vm1, %v204_v6, 0.0  ;;  %v210_v10 = vsel %vm154_vm1, %v202_v7, 0.0 }
 0x111   :  { %v190_v11 = vmul.f32 %v553_v63, %v169_v8  ;;  %217 = vadd.xlane.f32.xlu1 %v216_v9  ;;  %v166_v12 = vpop.xlane.xlu1 %165  ;;  %211 = vadd.xlane.f32.xlu2 %v210_v10  ;;  %v160_v13 = vpop.xlane.xlu0 %159 }
 0x112   :  { %v189_v14 = vmul.f32 %v553_v63, %v166_v12  ;;  %v187_v16 = vmul.f32 %v553_v63, %v160_v13 }
 0x113   :  { %v571_v15 = vsub.f32 %v150_v35, %v190_v11 }
 0x114   :  { %v574_v17 = vsub.f32 %v149_v36, %v189_v14  ;;  %v580_v20 = vsub.f32 %v147_v37, %v187_v16  ;;  %v630_v16 = vld [vmem:[%s714_s4] ss:$0 sm:$0xff] }
 0x115   :  { %v206_v18 = vmul.f32 %v571_v15, %v571_v15 }
 0x116   :  { %v205_v19 = vmul.f32 %v574_v17, %v574_v17  ;;  %v203_v30 = vmul.f32 %v580_v20, %v580_v20 }
 0x117   :  { %v222_v21 = vsel %vm154_vm1, %v206_v18, 0.0 }
 0x118   :  { %v172_v22 = vpop.xlane.xlu2 %171  ;;  %223 = vadd.xlane.f32.xlu0 %v222_v21  ;;  %v219_v23 = vsel %vm154_vm1, %v205_v19, 0.0  ;;  %v213_v36 = vsel %vm154_vm1, %v203_v30, 0.0 }
 0x119   :  { %v191_v24 = vmul.f32 %v553_v63, %v172_v22  ;;  %v178_v25 = vpop.xlane.xlu1 %177  ;;  %220 = vadd.xlane.f32.xlu2 %v219_v23  ;;  %v175_v26 = vpop.xlane.xlu0 %174  ;;  %v637_v23 = vld [vmem:[%s715_s5] ss:$0 sm:$0xff] }
 0x11a   :  { %v192_v27 = vmul.f32 %v553_v63, %v175_v26  ;;  %v193_v29 = vmul.f32 %v553_v63, %v178_v25 }
 0x11b   :  { %v586_v28 = vsub.f32 %v151_v52, %v191_v24 }
 0x11c   :  { %v591_v31 = vsub.f32 %v152_v51, %v192_v27  ;;  %v597_v34 = vsub.f32 %v153_v53, %v193_v29 }
 0x11d   :  { %v207_v32 = vmul.f32 %v586_v28, %v586_v28 }
 0x11e   :  { %v208_v33 = vmul.f32 %v591_v31, %v591_v31  ;;  %v209_v38 = vmul.f32 %v597_v34, %v597_v34 }
 0x11f   :  { %v225_v35 = vsel %vm154_vm1, %v207_v32, 0.0 }
 0x120   :  { %226 = vadd.xlane.f32.xlu1 %v225_v35  ;;  %214 = vadd.xlane.f32.xlu0 %v213_v36  ;;  %v228_v37 = vsel %vm154_vm1, %v208_v33, 0.0  ;;  %v231_v39 = vsel %vm154_vm1, %v209_v38, 0.0 }
 0x121   :  { %229 = vadd.xlane.f32.xlu2 %v228_v37 }
 0x128   :  { %232 = vadd.xlane.f32.xlu0 %v231_v39 }
 0x184   :  { %v218_v40 = vpop.xlane.xlu1 %217  ;;  %v212_v41 = vpop.xlane.xlu2 %211 }
 0x185   :  { %v236_v42 = vmul.f32 %v218_v40, %v553_v63  ;;  %v234_v43 = vmul.f32 %v212_v41, %v553_v63 }
 0x187   :  { %v244_v44 = vadd.f32 1e-05, %v236_v42  ;;  %v242_v45 = vadd.f32 1e-05, %v234_v43 }
 0x189   :  { %436 = vrsqrt.f32 %v244_v44  ;;  %vm276_vm5 = vweird.f32 %v244_v44  ;;  %vm256_vm7 = vweird.f32 %v242_v45 }
 0x18a   :  { %438 = vrsqrt.f32 %v242_v45 }
 0x18b   :  { %v224_v46 = vpop.xlane.xlu0 %223 }
 0x18c   :  { %v238_v47 = vmul.f32 %v224_v46, %v553_v63  ;;  %v221_v48 = vpop.xlane.xlu2 %220 }
 0x18d   :  { %v237_v49 = vmul.f32 %v221_v48, %v553_v63 }
 0x18e   :  { %v609_v50 = vadd.f32 1e-05, %v238_v47 }
 0x18f   :  { %v437_v51 = vpop.eup %436  ;;  %v611_v52 = vadd.f32 1e-05, %v237_v49 }
 0x190   :  { %v439_v53 = vpop.eup %438  ;;  %v271_v54 = vmul.f32 %v437_v51, %v244_v44  ;;  %440 = vrsqrt.f32 %v609_v50  ;;  %vm277_vm3 = vweird.f32 %v437_v51  ;;  %vm296_vm11 = vweird.f32 %v609_v50 }
 0x191   :  { %v251_v55 = vmul.f32 %v439_v53, %v242_v45  ;;  %442 = vrsqrt.f32 %v611_v52  ;;  %vm257_vm4 = vweird.f32 %v439_v53  ;;  %vm278_vm6 = vmor %vm276_vm5, %vm277_vm3  ;;  %vm286_vm13 = vweird.f32 %v611_v52 }
 0x192   :  { %v272_v56 = vmul.f32 %v437_v51, %v271_v54  ;;  %vm258_vm8 = vmor %vm256_vm7, %vm257_vm4 }
 0x193   :  { %v252_v57 = vmul.f32 %v439_v53, %v251_v55  ;;  %v227_v58 = vpop.xlane.xlu1 %226  ;;  %v215_v59 = vpop.xlane.xlu0 %214 }
 0x194   :  { %v273_v60 = vmul.f32 0.5, %v272_v56  ;;  %v239_v61 = vmul.f32 %v227_v58, %v553_v63  ;;  %v235_v62 = vmul.f32 %v215_v59, %v553_v63  ;;  %v230_v0 = vpop.xlane.xlu2 %229 }
 0x195   :  { %v253_v1 = vmul.f32 0.5, %v252_v57  ;;  %v240_v2 = vmul.f32 %v230_v0, %v553_v63 }
 0x196   :  { %v441_v3 = vpop.eup %440  ;;  %v274_v6 = vsub.f32 1.5, %v273_v60  ;;  %v618_v7 = vadd.f32 1e-05, %v239_v61  ;;  %v620_v8 = vadd.f32 1e-05, %v235_v62 }
 0x197   :  { %v443_v9 = vpop.eup %442  ;;  %v254_v10 = vsub.f32 1.5, %v253_v1  ;;  %v291_v11 = vmul.f32 %v441_v3, %v609_v50  ;;  %v623_v12 = vadd.f32 1e-05, %v240_v2  ;;  %vm297_vm9 = vweird.f32 %v441_v3 }
 0x198   :  { %v275_v13 = vmul.f32 %v437_v51, %v274_v6  ;;  %v281_v14 = vmul.f32 %v443_v9, %v611_v52  ;;  %444 = vrsqrt.f32 %v618_v7  ;;  %vm287_vm10 = vweird.f32 %v443_v9  ;;  %vm298_vm12 = vmor %vm296_vm11, %vm297_vm9 }
 0x199   :  { %v255_v18 = vmul.f32 %v439_v53, %v254_v10  ;;  %v292_v19 = vmul.f32 %v441_v3, %v291_v11  ;;  %446 = vrsqrt.f32 %v620_v8  ;;  %vm288_vm14 = vmor %vm286_vm13, %vm287_vm10  ;;  %vm306_vm0 = vweird.f32 %v618_v7 }
 0x19a   :  { %v279_v21 = vsel %vm278_vm6, %v437_v51, %v275_v13  ;;  %v282_v22 = vmul.f32 %v443_v9, %v281_v14  ;;  %448 = vrsqrt.f32 %v623_v12  ;;  %vm266_vm5 = vweird.f32 %v620_v8 }
 0x19b   :  { %v332_v24 = vmul.f32 %v279_v21, %v558_v4  ;;  %v259_v25 = vsel %vm258_vm8, %v439_v53, %v255_v18  ;;  %v293_v26 = vmul.f32 0.5, %v292_v19  ;;  %v233_v27 = vpop.xlane.xlu0 %232  ;;  %vm316_vm7 = vweird.f32 %v623_v12 }
 0x19c   :  { %v330_v29 = vmul.f32 %v259_v25, %v561_v5  ;;  %v283_v30 = vmul.f32 0.5, %v282_v22  ;;  %v241_v32 = vmul.f32 %v233_v27, %v553_v63 }
 0x19d   :  { %v344_v33 = vmul.f32 %v630_v16, %v332_v24  ;;  %v294_v35 = vsub.f32 1.5, %v293_v26 }
 0x19e   :  { %v445_v36 = vpop.eup %444  ;;  %v342_v37 = vmul.f32 %v630_v16, %v330_v29  ;;  %v284_v38 = vsub.f32 1.5, %v283_v30  ;;  %v644_v39 = vadd.f32 1e-05, %v241_v32 }
 0x19f   :  { %v447_v4 = vpop.eup %446  ;;  %v356_v40 = vadd.f32 %v637_v23, %v344_v33  ;;  %v295_v41 = vmul.f32 %v441_v3, %v294_v35  ;;  %v301_v5 = vmul.f32 %v445_v36, %v618_v7  ;;  %vm307_vm15 = vweird.f32 %v445_v36 }
 0x1a0   :  { %v449_v63 = vpop.eup %448  ;;  %v354_v42 = vadd.f32 %v637_v23, %v342_v37  ;;  %v285_v43 = vmul.f32 %v443_v9, %v284_v38  ;;  %v261_v44 = vmul.f32 %v447_v4, %v620_v8  ;;  %450 = vrsqrt.f32 %v644_v39  ;;  %vm308_vm4 = vmor %vm306_vm0, %vm307_vm15 }
 0x1a1   :  { %364 = vst.msk [vmem:[%s716_s6 + $0x10] sm:$0xff] %vm154_vm1, %v356_v40  ;;  %v299_v45 = vsel %vm298_vm12, %v441_v3, %v295_v41  ;;  %v302_v46 = vmul.f32 %v445_v36, %v301_v5  ;;  %v311_v47 = vmul.f32 %v449_v63, %v623_v12  ;;  %vm267_vm2 = vweird.f32 %v447_v4 }
 0x1a2   :  { %362 = vst.msk [vmem:[%s716_s6] sm:$0xff] %vm154_vm1, %v354_v42  ;;  %v334_v48 = vmul.f32 %v299_v45, %v571_v15  ;;  %v289_v49 = vsel %vm288_vm14, %v443_v9, %v285_v43  ;;  %v262_v50 = vmul.f32 %v447_v4, %v261_v44  ;;  %vm317_vm3 = vweird.f32 %v449_v63  ;;  %vm268_vm6 = vmor %vm266_vm5, %vm267_vm2 }
 0x1a3   :  { %v333_v51 = vmul.f32 %v289_v49, %v574_v17  ;;  %v303_v52 = vmul.f32 0.5, %v302_v46  ;;  %v312_v53 = vmul.f32 %v449_v63, %v311_v47  ;;  %vm318_vm8 = vmor %vm316_vm7, %vm317_vm3  ;;  %vm326_vm10 = vweird.f32 %v644_v39 }
 0x1a4   :  { %v346_v54 = vmul.f32 %v630_v16, %v334_v48  ;;  %v263_v55 = vmul.f32 0.5, %v262_v50 }
 0x1a5   :  { %v345_v56 = vmul.f32 %v630_v16, %v333_v51  ;;  %v304_v57 = vsub.f32 1.5, %v303_v52  ;;  %v313_v58 = vmul.f32 0.5, %v312_v53 }
 0x1a6   :  { %v358_v59 = vadd.f32 %v637_v23, %v346_v54  ;;  %v264_v15 = vsub.f32 1.5, %v263_v55  ;;  %v451_v62 = vpop.eup %450 }
 0x1a7   :  { %v357_v60 = vadd.f32 %v637_v23, %v345_v56  ;;  %v305_v61 = vmul.f32 %v445_v36, %v304_v57  ;;  %v314_v17 = vsub.f32 1.5, %v313_v58  ;;  %v321_v3 = vmul.f32 %v451_v62, %v644_v39 }
 0x1a8   :  { %366 = vst.msk [vmem:[%s716_s6 + $0x20] sm:$0xff] %vm154_vm1, %v358_v59  ;;  %v265_v0 = vmul.f32 %v447_v4, %v264_v15  ;;  %vm327_vm9 = vweird.f32 %v451_v62 }
 0x1a9   :  { %365 = vst.msk [vmem:[%s716_s6 + $0x18] sm:$0xff] %vm154_vm1, %v357_v60  ;;  %v309_v1 = vsel %vm308_vm4, %v445_v36, %v305_v61  ;;  %v315_v2 = vmul.f32 %v449_v63, %v314_v17  ;;  %v322_v8 = vmul.f32 %v451_v62, %v321_v3  ;;  %vm328_vm11 = vmor %vm326_vm10, %vm327_vm9 }
 0x1aa   :  { %v335_v6 = vmul.f32 %v309_v1, %v586_v28  ;;  %v269_v7 = vsel %vm268_vm6, %v447_v4, %v265_v0 }
 0x1ab   :  { %v331_v9 = vmul.f32 %v269_v7, %v580_v20  ;;  %v319_v10 = vsel %vm318_vm8, %v449_v63, %v315_v2  ;;  %v323_v18 = vmul.f32 0.5, %v322_v8 }
 0x1ac   :  { %v347_v11 = vmul.f32 %v630_v16, %v335_v6  ;;  %v336_v13 = vmul.f32 %v319_v10, %v591_v31 }
 0x1ad   :  { %v343_v14 = vmul.f32 %v630_v16, %v331_v9  ;;  %v324_v28 = vsub.f32 1.5, %v323_v18 }
 0x1ae   :  { %v359_v19 = vadd.f32 %v637_v23, %v347_v11  ;;  %v348_v12 = vmul.f32 %v630_v16, %v336_v13 }
 0x1af   :  { %v355_v21 = vadd.f32 %v637_v23, %v343_v14  ;;  %v325_v31 = vmul.f32 %v451_v62, %v324_v28 }
 0x1b0   :  { %367 = vst.msk [vmem:[%s716_s6 + $0x28] sm:$0xff] %vm154_vm1, %v359_v19  ;;  %v360_v20 = vadd.f32 %v637_v23, %v348_v12 }
 0x1b1   :  { %363 = vst.msk [vmem:[%s716_s6 + $0x8] sm:$0xff] %vm154_vm1, %v355_v21  ;;  %v329_v22 = vsel %vm328_vm11, %v451_v62, %v325_v31 }
 0x1b2   :  { %368 = vst.msk [vmem:[%s716_s6 + $0x30] sm:$0xff] %vm154_vm1, %v360_v20  ;;  %v337_v24 = vmul.f32 %v329_v22, %v597_v34 }
 0x1b4   :  { %v349_v25 = vmul.f32 %v630_v16, %v337_v24 }
 0x1b6   :  { %v361_v26 = vadd.f32 %v637_v23, %v349_v25 }
 0x1b8   :  { %369 = vst.msk [vmem:[%s716_s6 + $0x38] sm:$0xff] %vm154_vm1, %v361_v26 }

</bundles_post_ra>
